<compile_context>
chip_gen: v6e
topology: v6e:2x2x1
jax: 0.10.0
libtpu: 0.0.40
codegen_flags: <defaults>
</compile_context>

<pallas_src>
import functools

import jax
import jax.numpy as jnp
from jax.experimental import pallas as pl
from jax.experimental.pallas import tpu as pltpu


# ----------------------------------------------------------------------------
# Fused decoder kernel
# ----------------------------------------------------------------------------
def _fused_decoder_kernel(
    xt_ref, xl_ref, u_ref,
    w1_ref, wat_ref, wal_ref, wb_ref, w4_ref,
    b1_ref, ba_ref, bb_ref, b4_ref,
    x3_ref, seg_ref,
    xt1_sc,
):
    # conv1 + BN1 (folded). Only needed once per batch element; cache the
    # low-res result in VMEM scratch and reuse it across the spatial row tiles.
    @pl.when(pl.program_id(1) == 0)
    def _():
        acc1 = jnp.dot(xt_ref[0], w1_ref[...],
                       preferred_element_type=jnp.float32)
        xt1_sc[...] = (acc1 + b1_ref[...]).astype(jnp.bfloat16)

    # Bilinear upsample (align_corners=True) for this tile of output rows,
    # expressed as a single small matmul against the interpolation matrix.
    xt_up = jnp.dot(u_ref[...], xt1_sc[...],
                    preferred_element_type=jnp.float32)

    # conv3a + BN, with conv2+BN2+concat algebraically folded in.
    x3a = (
        jnp.dot(xt_up.astype(jnp.bfloat16), wat_ref[...],
                preferred_element_type=jnp.float32)
        + jnp.dot(xl_ref[0], wal_ref[...],
                  preferred_element_type=jnp.float32)
        + ba_ref[...]
    )

    # conv3b + BN.
    x3 = jnp.dot(x3a.astype(jnp.bfloat16), wb_ref[...],
                 preferred_element_type=jnp.float32) + bb_ref[...]
    x3_ref[0] = x3.astype(x3_ref.dtype)

    # conv4 (num_classes channels zero-padded up to a full 128 lanes so the
    # store is lane-dense; wrapper slices the real classes).
    seg = jnp.dot(x3.astype(jnp.bfloat16), w4_ref[...],
                  preferred_element_type=jnp.float32) + b4_ref[...]
    seg_ref[0] = seg.astype(seg_ref.dtype)


def _pick_row_tile(hw, n):
    """Pick a spatial row tile: prefer >=4 total grid steps, tiles >=128 rows."""
    for cand in (512, 256, 128):
        if hw % cand == 0 and n * (hw // cand) >= 4:
            return cand
    for cand in (512, 256, 128):
        if hw % cand == 0:
            return cand
    # TODO(synk): pad ragged spatial sizes up to a multiple of 128 and mask.
    assert hw % 8 == 0, "spatial size must be a multiple of 8"
    return hw


# ----------------------------------------------------------------------------
# Bilinear (align_corners=True) interpolation matrices
# ----------------------------------------------------------------------------
def interp_matrix(out_size, in_size):
    if out_size == 1:
        src = jnp.zeros((1,), jnp.float32)
    else:
        src = jnp.arange(out_size, dtype=jnp.float32) * (in_size - 1) / (out_size - 1)
    p0 = jnp.clip(jnp.floor(src).astype(jnp.int32), 0, in_size - 1)
    p1 = jnp.clip(p0 + 1, 0, in_size - 1)
    frac = src - p0.astype(jnp.float32)
    mat = jnp.zeros((out_size, in_size), jnp.float32)
    rows = jnp.arange(out_size)
    mat = mat.at[rows, p0].add(1.0 - frac)
    mat = mat.at[rows, p1].add(frac)
    return mat


# ----------------------------------------------------------------------------
# Decoder_Module forward (single fused Pallas kernel)
# ----------------------------------------------------------------------------
def decoder_forward(xt_nchw, xl_nchw, fp, num_classes):
    n, c_t, ht, wt = xt_nchw.shape
    _, c_l, h, w = xl_nchw.shape
    assert c_t == 512 and c_l == 256
    hw, htwt = h * w, ht * wt
    tile = _pick_row_tile(hw, n)
    jt = hw // tile
    ncpad = fp["w4"].shape[1]

    # NHWC, flatten spatial, cast activations to bf16 once.
    xt = jnp.transpose(xt_nchw, (0, 2, 3, 1)).reshape(n, htwt, c_t).astype(jnp.bfloat16)
    xl = jnp.transpose(xl_nchw, (0, 2, 3, 1)).reshape(n, hw, c_l).astype(jnp.bfloat16)

    # Combined separable interpolation matrix: (h*w, ht*wt).
    wh = interp_matrix(h, ht)
    ww = interp_matrix(w, wt)
    u = jnp.einsum("ip,jq->ijpq", wh, ww).reshape(hw, htwt).astype(jnp.bfloat16)

    const = lambda i, j: (0, 0)
    x3, segp = pl.pallas_call(
        _fused_decoder_kernel,
        out_shape=(
            jax.ShapeDtypeStruct((n, hw, 256), jnp.float32),
            jax.ShapeDtypeStruct((n, hw, ncpad), jnp.float32),
        ),
        grid_spec=pltpu.PrefetchScalarGridSpec(
            num_scalar_prefetch=0,
            grid=(n, jt),
            in_specs=[
                pl.BlockSpec((1, htwt, c_t), lambda i, j: (i, 0, 0)),   # xt
                pl.BlockSpec((1, tile, c_l), lambda i, j: (i, j, 0)),   # xl
                pl.BlockSpec((tile, htwt), lambda i, j: (j, 0)),        # interp U
                pl.BlockSpec((c_t, 256), const),                        # w1 (BN folded)
                pl.BlockSpec((256, 256), const),                        # w3a top (BN folded)
                pl.BlockSpec((256, 256), const),                        # conv2+conv3a bottom fold
                pl.BlockSpec((256, 256), const),                        # w3b (BN folded)
                pl.BlockSpec((256, ncpad), const),                      # w4 (lane padded)
                pl.BlockSpec((1, 256), const),                          # b1
                pl.BlockSpec((1, 256), const),                          # b3a (with conv2 fold)
                pl.BlockSpec((1, 256), const),                          # b3b
                pl.BlockSpec((1, ncpad), const),                        # b4 (lane padded)
            ],
            out_specs=[
                pl.BlockSpec((1, tile, 256), lambda i, j: (i, j, 0)),
                pl.BlockSpec((1, tile, ncpad), lambda i, j: (i, j, 0)),
            ],
            scratch_shapes=[pltpu.VMEM((htwt, 256), jnp.bfloat16)],
        ),
        compiler_params=pltpu.CompilerParams(
            dimension_semantics=("parallel", "arbitrary"),
            vmem_limit_bytes=32 * 1024 * 1024,
        ),
    )(xt, xl, u,
      fp["w1"], fp["wat"], fp["wal"], fp["wb"], fp["w4"],
      fp["b1"], fp["ba"], fp["bb"], fp["b4"])

    seg = segp[:, :, :num_classes]
    seg = jnp.transpose(seg.reshape(n, h, w, num_classes), (0, 3, 1, 2))   # NCHW
    x_out = jnp.transpose(x3.reshape(n, h, w, 256), (0, 3, 1, 2))          # NCHW
    return seg, x_out


# ----------------------------------------------------------------------------
# Parameter construction + offline folding
# ----------------------------------------------------------------------------
def init_params(key, num_classes):
    eps = 1e-5

    def conv_w(k, cin, cout):
        return jax.random.normal(k, (cin, cout), jnp.float32) / jnp.sqrt(float(cin))

    def bn(k, c):
        k1, k2, k3, k4 = jax.random.split(k, 4)
        gamma = jax.random.uniform(k1, (c,), jnp.float32, 0.8, 1.2)
        beta = 0.1 * jax.random.normal(k2, (c,), jnp.float32)
        mean = 0.1 * jax.random.normal(k3, (c,), jnp.float32)
        var = jax.random.uniform(k4, (c,), jnp.float32, 0.5, 1.5)
        scale = gamma / jnp.sqrt(var + eps)
        bias = beta - mean * scale
        return scale, bias

    ks = jax.random.split(key, 10)
    p = {}
    p["w1"] = conv_w(ks[0], 512, 256)
    p["s1"], p["b1"] = bn(ks[1], 256)
    p["w2"] = conv_w(ks[2], 256, 48)
    p["s2"], p["b2"] = bn(ks[3], 48)
    p["w3a"] = conv_w(ks[4], 304, 256)
    p["s3a"], p["b3a"] = bn(ks[5], 256)
    p["w3b"] = conv_w(ks[6], 256, 256)
    p["s3b"], p["b3b"] = bn(ks[7], 256)
    p["w4"] = conv_w(ks[8], 256, num_classes)
    p["b4"] = 0.1 * jax.random.normal(ks[9], (num_classes,), jnp.float32)
    return p


def fold_params(p, num_classes):
    """Fold BN scales into weights, fold conv2+concat into conv3a, pad conv4,
    and cast everything once (bf16 weights, f32 biases)."""
    f32 = jnp.float32
    bf16 = jnp.bfloat16

    w1e = p["w1"] * p["s1"][None, :]
    b1e = p["b1"]

    w3a_top = p["w3a"][:256]            # xt_up channels
    w3a_bot = p["w3a"][256:]            # xl2 (48) channels
    wat = w3a_top * p["s3a"][None, :]
    wal = (p["w2"] * p["s2"][None, :]) @ (w3a_bot * p["s3a"][None, :])
    ba = p["b3a"] + (p["b2"] @ w3a_bot) * p["s3a"]

    wb = p["w3b"] * p["s3b"][None, :]
    bb = p["b3b"]

    ncpad = max(128, ((num_classes + 127) // 128) * 128)
    w4p = jnp.zeros((256, ncpad), f32).at[:, :num_classes].set(p["w4"])
    b4p = jnp.zeros((ncpad,), f32).at[:num_classes].set(p["b4"])

    return dict(
        w1=w1e.astype(bf16), b1=b1e.reshape(1, -1).astype(f32),
        wat=wat.astype(bf16), wal=wal.astype(bf16), ba=ba.reshape(1, -1).astype(f32),
        wb=wb.astype(bf16), bb=bb.reshape(1, -1).astype(f32),
        w4=w4p.astype(bf16), b4=b4p.reshape(1, -1).astype(f32),
    )


# ----------------------------------------------------------------------------
# Pure-JAX reference (unfused, f32) for sanity check
# ----------------------------------------------------------------------------
def reference_forward(xt_nchw, xl_nchw, params, num_classes):
    hp = jax.lax.Precision.HIGHEST
    xt = jnp.transpose(xt_nchw, (0, 2, 3, 1))
    xl = jnp.transpose(xl_nchw, (0, 2, 3, 1))
    n, ht, wt, _ = xt.shape
    _, h, w, _ = xl.shape

    def conv(x, wgt, s, b):
        return jnp.einsum("nhwc,cd->nhwd", x, wgt, precision=hp) * s + b

    xt1 = conv(xt, params["w1"], params["s1"], params["b1"])
    wh = interp_matrix(h, ht)
    ww = interp_matrix(w, wt)
    xt_up = jnp.einsum("ip,jq,npqc->nijc", wh, ww, xt1, precision=hp)
    xl2 = conv(xl, params["w2"], params["s2"], params["b2"])
    xc = jnp.concatenate([xt_up, xl2], axis=-1)
    x3 = conv(xc, params["w3a"], params["s3a"], params["b3a"])
    x3 = conv(x3, params["w3b"], params["s3b"], params["b3b"])
    seg = jnp.einsum("nhwc,cd->nhwd", x3, params["w4"], precision=hp) + params["b4"]
    return jnp.transpose(seg, (0, 3, 1, 2)), jnp.transpose(x3, (0, 3, 1, 2))


# ----------------------------------------------------------------------------
if __name__ == "__main__":
    num_classes = 8
    n, ht, wt, h, w = 2, 8, 8, 16, 16

    key = jax.random.PRNGKey(0)
    k_xt, k_xl, k_p = jax.random.split(key, 3)
    xt = jax.random.normal(k_xt, (n, 512, ht, wt), jnp.float32)
    xl = jax.random.normal(k_xl, (n, 256, h, w), jnp.float32)
    params = init_params(k_p, num_classes)
    fp = fold_params(params, num_classes)     # fold + cast once, outside forward

    fwd = jax.jit(functools.partial(decoder_forward, num_classes=num_classes))
    seg, x_feat = jax.block_until_ready(fwd(xt, xl, fp))

    assert seg.shape == (n, num_classes, h, w)
    assert x_feat.shape == (n, 256, h, w)

    seg_ref, xf_ref = reference_forward(xt, xl, params, num_classes)

    def max_rel(a, b):
        return float(jnp.max(jnp.abs(a - b)) / (jnp.max(jnp.abs(b)) + 1e-12))

    assert max_rel(seg, seg_ref) < 3e-2, f"seg err {max_rel(seg, seg_ref)}"
    assert max_rel(x_feat, xf_ref) < 3e-2, f"x err {max_rel(x_feat, xf_ref)}"

    print("KERNEL_OK")
</pallas_src>

<mosaic_0001>
module attributes {stable_mosaic.version = 11 : i64} {
  func.func private @main(%arg0: i32) attributes {dimension_semantics = [#tpu.dimension_semantics<core_parallel>], iteration_bounds = array<i64: 2>, tpu.core_type = #tpu.core_type<sc_scalar_subcore>, window_params = []} {
    return
  }
}

module attributes {stable_mosaic.version = 11 : i64} {
  func.func private @main(%arg0: i32) attributes {dimension_semantics = [#tpu.dimension_semantics<core_parallel>], iteration_bounds = array<i64: 2>, tpu.core_type = #tpu.core_type<sc_scalar_subcore>, window_params = []} {
    return
  }
}

module attributes {stable_mosaic.version = 11 : i64} {
  func.func @_fused_decoder_kernel(%arg0: i32, %arg1: i32, %arg2: memref<1x64x512xbf16, #tpu.memory_space<vmem>>, %arg3: memref<1x128x256xbf16, #tpu.memory_space<vmem>>, %arg4: memref<128x64xbf16, #tpu.memory_space<vmem>>, %arg5: memref<512x256xbf16, #tpu.memory_space<vmem>>, %arg6: memref<256x256xbf16, #tpu.memory_space<vmem>>, %arg7: memref<256x256xbf16, #tpu.memory_space<vmem>>, %arg8: memref<256x256xbf16, #tpu.memory_space<vmem>>, %arg9: memref<256x128xbf16, #tpu.memory_space<vmem>>, %arg10: memref<1x256xf32, #tpu.memory_space<vmem>>, %arg11: memref<1x256xf32, #tpu.memory_space<vmem>>, %arg12: memref<1x256xf32, #tpu.memory_space<vmem>>, %arg13: memref<1x128xf32, #tpu.memory_space<vmem>>, %arg14: memref<1x128x256xf32, #tpu.memory_space<vmem>>, %arg15: memref<1x128x128xf32, #tpu.memory_space<vmem>>, %arg16: memref<64x256xbf16, #tpu.memory_space<vmem>>) attributes {dimension_semantics = [#tpu.dimension_semantics<parallel>, #tpu.dimension_semantics<arbitrary>], iteration_bounds = array<i64: 2, 2>, scalar_prefetch = 0 : i64, scratch_operands = 1 : i64, tpu.core_type = #tpu.core_type<tc>, window_params = [{transform_indices = @transform_0, window_bounds = array<i64: 1, 64, 512>}, {transform_indices = @transform_1, window_bounds = array<i64: 1, 128, 256>}, {transform_indices = @transform_2, window_bounds = array<i64: 128, 64>}, {pipeline_mode = #tpu.pipeline_mode<synchronous>, transform_indices = @transform_3, window_bounds = array<i64: 512, 256>}, {pipeline_mode = #tpu.pipeline_mode<synchronous>, transform_indices = @transform_4, window_bounds = array<i64: 256, 256>}, {pipeline_mode = #tpu.pipeline_mode<synchronous>, transform_indices = @transform_5, window_bounds = array<i64: 256, 256>}, {pipeline_mode = #tpu.pipeline_mode<synchronous>, transform_indices = @transform_6, window_bounds = array<i64: 256, 256>}, {pipeline_mode = #tpu.pipeline_mode<synchronous>, transform_indices = @transform_7, window_bounds = array<i64: 256, 128>}, {pipeline_mode = #tpu.pipeline_mode<synchronous>, transform_indices = @transform_8, window_bounds = array<i64: 1, 256>}, {pipeline_mode = #tpu.pipeline_mode<synchronous>, transform_indices = @transform_9, window_bounds = array<i64: 1, 256>}, {pipeline_mode = #tpu.pipeline_mode<synchronous>, transform_indices = @transform_10, window_bounds = array<i64: 1, 256>}, {pipeline_mode = #tpu.pipeline_mode<synchronous>, transform_indices = @transform_11, window_bounds = array<i64: 1, 128>}, {transform_indices = @transform_12, window_bounds = array<i64: 1, 128, 256>}, {transform_indices = @transform_13, window_bounds = array<i64: 1, 128, 128>}]} {
    %c0_i32 = arith.constant 0 : i32
    %0 = arith.cmpi eq, %arg1, %c0_i32 : i32
    %1 = arith.extui %0 : i1 to i32
    %c0_i32_0 = arith.constant 0 : i32
    %2 = arith.cmpi ne, %1, %c0_i32_0 : i32
    scf.if %2 {
      %c0_31 = arith.constant 0 : index
      %c0_32 = arith.constant 0 : index
      %c0_33 = arith.constant 0 : index
      %35 = vector.load %arg2[%c0_31, %c0_32, %c0_33] : memref<1x64x512xbf16, #tpu.memory_space<vmem>>, vector<1x64x512xbf16>
      %36 = vector.shape_cast %35 : vector<1x64x512xbf16> to vector<64x512xbf16>
      %c0_34 = arith.constant 0 : index
      %c0_35 = arith.constant 0 : index
      %37 = vector.load %arg5[%c0_34, %c0_35] : memref<512x256xbf16, #tpu.memory_space<vmem>>, vector<512x256xbf16>
      %cst_36 = arith.constant dense<0.000000e+00> : vector<64x256xf32>
      %38 = tpu.matmul %36, %37, %cst_36 {dimension_numbers = #tpu.dot_dimension_numbers<[1], [0], [0], [1], [0, 0, 1, 1], [], []>} : vector<64x512xbf16>, vector<512x256xbf16>, vector<64x256xf32> -> vector<64x256xf32>
      %c0_37 = arith.constant 0 : index
      %c0_38 = arith.constant 0 : index
      %39 = vector.load %arg10[%c0_37, %c0_38] : memref<1x256xf32, #tpu.memory_space<vmem>>, vector<1x256xf32>
      %40 = vector.broadcast %39 : vector<1x256xf32> to vector<64x256xf32>
      %41 = arith.addf %38, %40 : vector<64x256xf32>
      %42 = arith.truncf %41 : vector<64x256xf32> to vector<64x256xbf16>
      %c0_39 = arith.constant 0 : index
      %c0_40 = arith.constant 0 : index
      %43 = vector.load %arg16[%c0_39, %c0_40] : memref<64x256xbf16, #tpu.memory_space<vmem>>, vector<64x256xbf16>
      tpu.vector_store %arg16[%c0_39, %c0_40], %42 {strides = array<i32>} : memref<64x256xbf16, #tpu.memory_space<vmem>>, vector<64x256xbf16>,
    } else {
    }
    %c0 = arith.constant 0 : index
    %c0_1 = arith.constant 0 : index
    %3 = vector.load %arg4[%c0, %c0_1] : memref<128x64xbf16, #tpu.memory_space<vmem>>, vector<128x64xbf16>
    %c0_2 = arith.constant 0 : index
    %c0_3 = arith.constant 0 : index
    %4 = vector.load %arg16[%c0_2, %c0_3] : memref<64x256xbf16, #tpu.memory_space<vmem>>, vector<64x256xbf16>
    %cst = arith.constant dense<0.000000e+00> : vector<128x256xf32>
    %5 = tpu.matmul %3, %4, %cst {dimension_numbers = #tpu.dot_dimension_numbers<[1], [0], [0], [1], [0, 0, 1, 1], [], []>} : vector<128x64xbf16>, vector<64x256xbf16>, vector<128x256xf32> -> vector<128x256xf32>
    %6 = arith.truncf %5 : vector<128x256xf32> to vector<128x256xbf16>
    %c0_4 = arith.constant 0 : index
    %c0_5 = arith.constant 0 : index
    %7 = vector.load %arg6[%c0_4, %c0_5] : memref<256x256xbf16, #tpu.memory_space<vmem>>, vector<256x256xbf16>
    %cst_6 = arith.constant dense<0.000000e+00> : vector<128x256xf32>
    %8 = tpu.matmul %6, %7, %cst_6 {dimension_numbers = #tpu.dot_dimension_numbers<[1], [0], [0], [1], [0, 0, 1, 1], [], []>} : vector<128x256xbf16>, vector<256x256xbf16>, vector<128x256xf32> -> vector<128x256xf32>
    %c0_7 = arith.constant 0 : index
    %c0_8 = arith.constant 0 : index
    %c0_9 = arith.constant 0 : index
    %9 = vector.load %arg3[%c0_7, %c0_8, %c0_9] : memref<1x128x256xbf16, #tpu.memory_space<vmem>>, vector<1x128x256xbf16>
    %10 = vector.shape_cast %9 : vector<1x128x256xbf16> to vector<128x256xbf16>
    %c0_10 = arith.constant 0 : index
    %c0_11 = arith.constant 0 : index
    %11 = vector.load %arg7[%c0_10, %c0_11] : memref<256x256xbf16, #tpu.memory_space<vmem>>, vector<256x256xbf16>
    %cst_12 = arith.constant dense<0.000000e+00> : vector<128x256xf32>
    %12 = tpu.matmul %10, %11, %cst_12 {dimension_numbers = #tpu.dot_dimension_numbers<[1], [0], [0], [1], [0, 0, 1, 1], [], []>} : vector<128x256xbf16>, vector<256x256xbf16>, vector<128x256xf32> -> vector<128x256xf32>
    %13 = arith.addf %8, %12 : vector<128x256xf32>
    %c0_13 = arith.constant 0 : index
    %c0_14 = arith.constant 0 : index
    %14 = vector.load %arg11[%c0_13, %c0_14] : memref<1x256xf32, #tpu.memory_space<vmem>>, vector<1x256xf32>
    %15 = vector.broadcast %14 : vector<1x256xf32> to vector<128x256xf32>
    %16 = arith.addf %13, %15 : vector<128x256xf32>
    %17 = arith.truncf %16 : vector<128x256xf32> to vector<128x256xbf16>
    %c0_15 = arith.constant 0 : index
    %c0_16 = arith.constant 0 : index
    %18 = vector.load %arg8[%c0_15, %c0_16] : memref<256x256xbf16, #tpu.memory_space<vmem>>, vector<256x256xbf16>
    %cst_17 = arith.constant dense<0.000000e+00> : vector<128x256xf32>
    %19 = tpu.matmul %17, %18, %cst_17 {dimension_numbers = #tpu.dot_dimension_numbers<[1], [0], [0], [1], [0, 0, 1, 1], [], []>} : vector<128x256xbf16>, vector<256x256xbf16>, vector<128x256xf32> -> vector<128x256xf32>
    %c0_18 = arith.constant 0 : index
    %c0_19 = arith.constant 0 : index
    %20 = vector.load %arg12[%c0_18, %c0_19] : memref<1x256xf32, #tpu.memory_space<vmem>>, vector<1x256xf32>
    %21 = vector.broadcast %20 : vector<1x256xf32> to vector<128x256xf32>
    %22 = arith.addf %19, %21 : vector<128x256xf32>
    %c0_20 = arith.constant 0 : index
    %c0_21 = arith.constant 0 : index
    %c0_22 = arith.constant 0 : index
    %23 = vector.load %arg14[%c0_20, %c0_21, %c0_22] : memref<1x128x256xf32, #tpu.memory_space<vmem>>, vector<1x128x256xf32>
    %24 = vector.shape_cast %23 : vector<1x128x256xf32> to vector<128x256xf32>
    %25 = vector.shape_cast %22 : vector<128x256xf32> to vector<1x128x256xf32>
    tpu.vector_store %arg14[%c0_20, %c0_21, %c0_22], %25 {strides = array<i32>} : memref<1x128x256xf32, #tpu.memory_space<vmem>>, vector<1x128x256xf32>,
    %26 = arith.truncf %22 : vector<128x256xf32> to vector<128x256xbf16>
    %c0_23 = arith.constant 0 : index
    %c0_24 = arith.constant 0 : index
    %27 = vector.load %arg9[%c0_23, %c0_24] : memref<256x128xbf16, #tpu.memory_space<vmem>>, vector<256x128xbf16>
    %cst_25 = arith.constant dense<0.000000e+00> : vector<128x128xf32>
    %28 = tpu.matmul %26, %27, %cst_25 {dimension_numbers = #tpu.dot_dimension_numbers<[1], [0], [0], [1], [0, 0, 1, 1], [], []>} : vector<128x256xbf16>, vector<256x128xbf16>, vector<128x128xf32> -> vector<128x128xf32>
    %c0_26 = arith.constant 0 : index
    %c0_27 = arith.constant 0 : index
    %29 = vector.load %arg13[%c0_26, %c0_27] : memref<1x128xf32, #tpu.memory_space<vmem>>, vector<1x128xf32>
    %30 = vector.broadcast %29 : vector<1x128xf32> to vector<128x128xf32>
    %31 = arith.addf %28, %30 : vector<128x128xf32>
    %c0_28 = arith.constant 0 : index
    %c0_29 = arith.constant 0 : index
    %c0_30 = arith.constant 0 : index
    %32 = vector.load %arg15[%c0_28, %c0_29, %c0_30] : memref<1x128x128xf32, #tpu.memory_space<vmem>>, vector<1x128x128xf32>
    %33 = vector.shape_cast %32 : vector<1x128x128xf32> to vector<128x128xf32>
    %34 = vector.shape_cast %31 : vector<128x128xf32> to vector<1x128x128xf32>
    tpu.vector_store %arg15[%c0_28, %c0_29, %c0_30], %34 {strides = array<i32>} : memref<1x128x128xf32, #tpu.memory_space<vmem>>, vector<1x128x128xf32>,
    return
  }
  func.func @transform_0(%arg0: i32, %arg1: i32) -> (i32, i32, i32) {
    %c0_i32 = arith.constant 0 : i32
    %c0_i32_0 = arith.constant 0 : i32
    %c0_i32_1 = arith.constant 0 : i32
    return %arg0, %c0_i32, %c0_i32_0 : i32, i32, i32
  }
  func.func @transform_1(%arg0: i32, %arg1: i32) -> (i32, i32, i32) {
    %c0_i32 = arith.constant 0 : i32
    %c0_i32_0 = arith.constant 0 : i32
    return %arg0, %arg1, %c0_i32 : i32, i32, i32
  }
  func.func @transform_2(%arg0: i32, %arg1: i32) -> (i32, i32) {
    %c0_i32 = arith.constant 0 : i32
    %c0_i32_0 = arith.constant 0 : i32
    return %arg1, %c0_i32 : i32, i32
  }
  func.func @transform_3(%arg0: i32, %arg1: i32) -> (i32, i32) {
    %c0_i32 = arith.constant 0 : i32
    %c0_i32_0 = arith.constant 0 : i32
    %c0_i32_1 = arith.constant 0 : i32
    return %c0_i32, %c0_i32_0 : i32, i32
  }
  func.func @transform_4(%arg0: i32, %arg1: i32) -> (i32, i32) {
    %c0_i32 = arith.constant 0 : i32
    %c0_i32_0 = arith.constant 0 : i32
    %c0_i32_1 = arith.constant 0 : i32
    return %c0_i32, %c0_i32_0 : i32, i32
  }
  func.func @transform_5(%arg0: i32, %arg1: i32) -> (i32, i32) {
    %c0_i32 = arith.constant 0 : i32
    %c0_i32_0 = arith.constant 0 : i32
    %c0_i32_1 = arith.constant 0 : i32
    return %c0_i32, %c0_i32_0 : i32, i32
  }
  func.func @transform_6(%arg0: i32, %arg1: i32) -> (i32, i32) {
    %c0_i32 = arith.constant 0 : i32
    %c0_i32_0 = arith.constant 0 : i32
    %c0_i32_1 = arith.constant 0 : i32
    return %c0_i32, %c0_i32_0 : i32, i32
  }
  func.func @transform_7(%arg0: i32, %arg1: i32) -> (i32, i32) {
    %c0_i32 = arith.constant 0 : i32
    %c0_i32_0 = arith.constant 0 : i32
    %c0_i32_1 = arith.constant 0 : i32
    return %c0_i32, %c0_i32_0 : i32, i32
  }
  func.func @transform_8(%arg0: i32, %arg1: i32) -> (i32, i32) {
    %c0_i32 = arith.constant 0 : i32
    %c0_i32_0 = arith.constant 0 : i32
    %c0_i32_1 = arith.constant 0 : i32
    return %c0_i32, %c0_i32_0 : i32, i32
  }
  func.func @transform_9(%arg0: i32, %arg1: i32) -> (i32, i32) {
    %c0_i32 = arith.constant 0 : i32
    %c0_i32_0 = arith.constant 0 : i32
    %c0_i32_1 = arith.constant 0 : i32
    return %c0_i32, %c0_i32_0 : i32, i32
  }
  func.func @transform_10(%arg0: i32, %arg1: i32) -> (i32, i32) {
    %c0_i32 = arith.constant 0 : i32
    %c0_i32_0 = arith.constant 0 : i32
    %c0_i32_1 = arith.constant 0 : i32
    return %c0_i32, %c0_i32_0 : i32, i32
  }
  func.func @transform_11(%arg0: i32, %arg1: i32) -> (i32, i32) {
    %c0_i32 = arith.constant 0 : i32
    %c0_i32_0 = arith.constant 0 : i32
    %c0_i32_1 = arith.constant 0 : i32
    return %c0_i32, %c0_i32_0 : i32, i32
  }
  func.func @transform_12(%arg0: i32, %arg1: i32) -> (i32, i32, i32) {
    %c0_i32 = arith.constant 0 : i32
    %c0_i32_0 = arith.constant 0 : i32
    return %arg0, %arg1, %c0_i32 : i32, i32, i32
  }
  func.func @transform_13(%arg0: i32, %arg1: i32) -> (i32, i32, i32) {
    %c0_i32 = arith.constant 0 : i32
    %c0_i32_0 = arith.constant 0 : i32
    return %arg0, %arg1, %c0_i32 : i32, i32, i32
  }
}

</mosaic_0001>

<bundles_post_ra>
// kernel: decoder_forward.1
= control target key start
LH: loop header
LB: loop body
LE: loop exit
PB: predicated region body
PF: predicated region fallthrough
CT: control target
= control target key end

     0   :  { %s4973_s0 = inlined_call_operand.vmem [shape: bf16[2,64,512], index: 0, kind: input, shape index: {}]   ;;  %s4974_s1 = inlined_call_operand.vmem [shape: bf16[2,256,256], index: 1, kind: input, shape index: {}]   ;;  %s4975_s2 = inlined_call_operand.vmem [shape: bf16[256,64], index: 2, kind: input, shape index: {}]   ;;  %s4976_s3 = inlined_call_operand.vmem [shape: bf16[512,256], index: 3, kind: input, shape index: {}]   ;;  %s4977_s4 = inlined_call_operand.vmem [shape: bf16[256,256], index: 4, kind: input, shape index: {}]   ;;  %s4978_s5 = inlined_call_operand.vmem [shape: bf16[256,256], index: 5, kind: input, shape index: {}]   ;;  %s4979_s6 = inlined_call_operand.vmem [shape: bf16[256,256], index: 6, kind: input, shape index: {}]   ;;  %s4980_s7 = inlined_call_operand.vmem [shape: bf16[256,128], index: 7, kind: input, shape index: {}]   ;;  %s4981_s8 = inlined_call_operand.vmem [shape: f32[1,256], index: 8, kind: input, shape index: {}]   ;;  %s4982_s9 = inlined_call_operand.vmem [shape: f32[1,256], index: 9, kind: input, shape index: {}]   ;;  %s4983_s10 = inlined_call_operand.vmem [shape: f32[1,256], index: 10, kind: input, shape index: {}]   ;;  %s4984_s11 = inlined_call_operand.vmem [shape: f32[1,128], index: 11, kind: input, shape index: {}]   ;;  %s4985_s12 = inlined_call_operand.hbm [shape: f32[2,256,256], index: 12, kind: output, shape index: {0}]   ;;  %s4986_s13 = inlined_call_operand.vmem [shape: f32[2,256,128], index: 13, kind: output, shape index: {1}]  }
   0x1   :  { %5003 = sst [smem:[#allocation18_spill]] %s4980_s7 }
   0x2   :  { %5004 = sst [smem:[#allocation19_spill]] %s4982_s9 }
   0x3   :  { %5005 = sst [smem:[#allocation20_spill]] %s4983_s10 }
   0x4   :  { %5006 = sst [smem:[#allocation21_spill]] %s4984_s11 }
   0x5   :  { %5007 = sst [smem:[#allocation22_spill]] %s4985_s12 }
   0x6   :  { %19 = vsyncpa [#allocation4], 0 }
   0x7   :  { %21 = vsyncpa [#allocation4 + $0x1], 0  ;;  %s3973_s25 = smov 0   ;;  %s3975_s26 = smov 0  }
   0x8   :  { %s3977_s27 = smov 0   ;;  %s3979_s28 = smov 0  }
   0x9   :  { %s3981_s29 = smov 0   ;;  %s3983_s30 = smov 0  }
   0xa   :  { %s3985_s14 = smov 0   ;;  %s3987_s15 = smov 0  }
   0xb LB: > { %5008 = sst [smem:[#allocation6_spill]] %s3869_s25  ;;  %s3051_s16 = sadd.s32 4294967295, %s3897_s15   ;;  %s3897_s15 = sphi %s3987_s15, %s27_s15   ;;  %s3893_s14 = sphi %s3985_s14, %s5040_s14   ;;  %s3889_s30 = sphi %s3983_s30, %s5039_s30   ;;  %s3885_s29 = sphi %s3981_s29, %s5038_s29   ;;  %s3881_s28 = sphi %s3979_s28, %s5037_s28   ;;  %s3877_s27 = sphi %s3977_s27, %s5036_s27   ;;  %s3873_s26 = sphi %s3975_s26, %s5035_s26   ;;  %s3869_s25 = sphi %s3973_s25, %s5034_s25  }
   0xc   : > { %5009 = sst [smem:[#allocation7_spill]] %s3873_s26  ;;  %s3052_s17 = sadd.s32 4294967294, %s3897_s15  }
   0xd   : > { %5010 = sst [smem:[#allocation8_spill]] %s3877_s27  ;;  %s36_s18 = sadd.s32 1, %s3889_s30 }
   0xe   : > { %5011 = sst [smem:[#allocation9_spill]] %s3885_s29  ;;  %p37_p0 = scmp.ge.s32.totalorder %s36_s18, 2 }
   0xf   : > { %5012 = sst [smem:[#allocation10_spill]] %s3889_s30  ;;  %s39_s19 = sadd.s32 1, %s3893_s14 }
  0x10   : > { %5013 = sst [smem:[#allocation11_spill]] %s3893_s14  ;;  %p327_p1 = scmp.ne.s32.totalorder %s3877_s27, %s3873_s26 }
  0x11   : > { %5014 = sst [smem:[#allocation12_spill]] %s3897_s15  ;;  %p328_p2 = scmp.eq.s32.totalorder %s3051_s16, 3 }
  0x12   : > { %s5042_s18 = smov (%p37_p0, %s36_s18), 0  ;;  %s5044_s19 = smov (!%p37_p0, %s39_s19), %s3893_s14 }
  0x13   : > { %5015 = sst [smem:[#allocation13_spill]] %s5042_s18  ;;  %s313_s20 = ssub.s32 %s3889_s30, %s5042_s18 }
  0x14   : > { %p4024_p3 = por %p328_p2, %p327_p1  ;;  %p41_p4 = scmp.ge.s32.totalorder %s5044_s19, 2 }
  0x15   : > { %p333_p5 = scmp.ne.s32.totalorder %s3873_s26, %s3869_s25  ;;  %p334_p6 = scmp.eq.s32.totalorder %s3052_s17, 3 }
  0x16   : > { %s5016_s21 = scalar_select %p4024_p3, 1, 0 }
  0x17   : > { %p3055_p7 = scmp.ge.s32.totalorder %s3897_s15, 1  ;;  %s5046_s19 = smov (%p41_p4, %s5044_s19), 0 }
  0x18   : > { %5017 = sst [smem:[#allocation14_spill]] %s5016_s21  ;;  %p4033_p8 = por %p334_p6, %p333_p5 }
  0x19   : > { %5018 = sst [smem:[#allocation15_spill]] %s5046_s19  ;;  %p438_p9 = scmp.lt.s32.totalorder %s3897_s15, 5 }
  0x1a   : > { %s5019_s22 = scalar_select %p4033_p8, 1, 0 }
  0x1b   : > { %s312_s23 = ssub.s32 %s3893_s14, %s5046_s19  ;;  %s317_s24 = sadd.s32 1, %s3877_s27 }
  0x1c   : > { %5020 = sst [smem:[#allocation16_spill]] %s5019_s22  ;;  %s314_s16 = sor.u32 %s313_s20, %s312_s23 }
  0x1d   : > { %p439_p10 = pnand %p3055_p7, %p438_p9  ;;  %p315_p11 = scmp.eq.s32.totalorder %s314_s16, 0 }
  0x1e   : > { %s4999_s17 = sand.u32 (!%p439_p10), 1, %s3873_s26   ;;  %p506_p12 = scmp.lt.s32.totalorder (!%p439_p10), %s3885_s29, 1 }
  0x1f   : > { %s4042_s18 = scalar_select %p315_p11, %s3877_s27, %s317_s24  }
  0x20   : > { %442 = sbr.rel (%p439_p10) target bundleno = 1240 (0x4d8), region = 68  ;;  %s3056_s30 = sshll.u32 (!%p439_p10), %s4999_s17, 8 }
  0x21   : > { %5021 = sst [smem:[#allocation17_spill]] %s4042_s18  ;;  %s3059_s25 = sshll.u32 (!%p439_p10), %s3881_s28, 4 }
  0x22   : > { %p514_p13 = scmp.lt.s32.totalorder (!%p439_p10), %s3059_s25, 31  ;;  %p3068_p0 = scmp.ne.s32.totalorder (!%p439_p10), %s3881_s28, 0 }
  0x25   : > { %s507_s22 = scalar_select %p506_p12, %s3885_s29, 1 }
  0x26   : > { %s5048_s25 = smov (!%p514_p13, %s3059_s25), 31 }
  0x27   : > { %s3317_s19 = sshll.u32 %s507_s22, 7  ;;  %s3061_s20 = sshll.u32 %s507_s22, 6 }
  0x28   : > { %s4053_s24 = scalar_lea.vmem %s4973_s0, %s3317_s19  ;;  %s3060_s14 = sshll.u32 %s5048_s25, 1 }
  0x29   : > { %s518_s18 = sadd.s32 %s3061_s20, %s3060_s14  ;;  %s3064_s27 = sshll.u32 %s5048_s25, 2 }
  0x2a   : > { %s3062_s15 = sshll.u32 %s518_s18, 2  ;;  %s4058_s21 = scalar_lea.vmem %s4975_s2, %s3064_s27 }
  0x2b   : > { %s4063_s29 = scalar_lea.vmem %s4974_s1, %s3062_s15  ;;  %s3066_s10 = sshll.u32 %s507_s22, 5 }
  0x2c   : > { %s535_s9 = sadd.s32 %s3066_s10, %s5048_s25  ;;  %s4070_s14 = scalar_lea.vmem [#allocation3], %s3056_s30 }
  0x2d   : > { %s3067_s7 = sshll.u32 %s535_s9, 3  ;;  %543 = sbr.rel (%p3068_p0) target bundleno = 345 (0x159), region = 72 }
  0x2e   : > { %s4068_s16 = scalar_lea.vmem %s4986_s13, %s3067_s7 }
  0x32   : > { %v3481_v0 = vld [vmem:[%s4976_s3 + $0x74] ss:$8 sps:$4 sm:$0xff]   ;;  %v3485_v2 = vld [vmem:[%s4976_s3 + $0x70] ss:$8 sps:$4 sm:$0xff]   ;;  %v3487_v4 = vld [vmem:[%s4976_s3 + $0x64] ss:$8 sps:$4 sm:$0xff]  }
  0x33   : > { %v3483_v1 = vld [vmem:[%s4976_s3 + $0x174] ss:$8 sps:$4 sm:$0xff]   ;;  %1036 = vmatprep.subr.bf16.mxu0 %v3481_v0  ;;  %v3486_v3 = vld [vmem:[%s4976_s3 + $0x170] ss:$8 sps:$4 sm:$0xff]   ;;  %v3489_v5 = vld [vmem:[%s4976_s3 + $0x164] ss:$8 sps:$4 sm:$0xff]  }
  0x34   : > { %1109 = vmatprep.subr.bf16.mxu1 %v3483_v1  ;;  %1037 = vmatpush1.bf16.msra.mxu0 %v3485_v2  ;;  %v3491_v6 = vld [vmem:[%s4976_s3 + $0x60] ss:$8 sps:$4 sm:$0xff]   ;;  %v3493_v8 = vld [vmem:[%s4976_s3 + $0x54] ss:$8 sps:$4 sm:$0xff]   ;;  %v3497_v10 = vld [vmem:[%s4976_s3 + $0x50] ss:$8 sps:$4 sm:$0xff]  }
  0x35   : > { %1110 = vmatpush1.bf16.msra.mxu1 %v3486_v3  ;;  %1038 = vmatprep.subr.bf16.mxu0 %v3487_v4  ;;  %v3492_v7 = vld [vmem:[%s4976_s3 + $0x160] ss:$8 sps:$4 sm:$0xff]   ;;  %v3495_v9 = vld [vmem:[%s4976_s3 + $0x154] ss:$8 sps:$4 sm:$0xff]   ;;  %v3498_v11 = vld [vmem:[%s4976_s3 + $0x150] ss:$8 sps:$4 sm:$0xff]  }
  0x36   : > { %1111 = vmatprep.subr.bf16.mxu1 %v3489_v5  ;;  %v3499_v12 = vld [vmem:[%s4976_s3 + $0x44] ss:$8 sps:$4 sm:$0xff]   ;;  %v3503_v14 = vld [vmem:[%s4976_s3 + $0x40] ss:$8 sps:$4 sm:$0xff]   ;;  %v3505_v16 = vld [vmem:[%s4976_s3 + $0x34] ss:$8 sps:$4 sm:$0xff]  }
  0x37   : > { %v3501_v13 = vld [vmem:[%s4976_s3 + $0x144] ss:$8 sps:$4 sm:$0xff]   ;;  %v3504_v15 = vld [vmem:[%s4976_s3 + $0x140] ss:$8 sps:$4 sm:$0xff]   ;;  %v3507_v17 = vld [vmem:[%s4976_s3 + $0x134] ss:$8 sps:$4 sm:$0xff]  }
  0x38   : > { %1039 = vmatpush1.bf16.msra.mxu0 %v3491_v6  ;;  %v3509_v18 = vld [vmem:[%s4976_s3 + $0x30] ss:$8 sps:$4 sm:$0xff]   ;;  %v3511_v20 = vld [vmem:[%s4976_s3 + $0x24] ss:$8 sps:$4 sm:$0xff]   ;;  %v3515_v22 = vld [vmem:[%s4976_s3 + $0x20] ss:$8 sps:$4 sm:$0xff]  }
  0x39   : > { %1112 = vmatpush1.bf16.msra.mxu1 %v3492_v7  ;;  %1040 = vmatprep.subr.bf16.mxu0 %v3493_v8  ;;  %v3510_v19 = vld [vmem:[%s4976_s3 + $0x130] ss:$8 sps:$4 sm:$0xff]   ;;  %v3513_v21 = vld [vmem:[%s4976_s3 + $0x124] ss:$8 sps:$4 sm:$0xff]   ;;  %v3516_v23 = vld [vmem:[%s4976_s3 + $0x120] ss:$8 sps:$4 sm:$0xff]  }
  0x3a   : > { %1113 = vmatprep.subr.bf16.mxu1 %v3495_v9  ;;  %v3517_v24 = vld [vmem:[%s4976_s3 + $0x14] ss:$8 sps:$4 sm:$0xff]   ;;  %v3521_v26 = vld [vmem:[%s4976_s3 + $0x10] ss:$8 sps:$4 sm:$0xff]   ;;  %v3523_v28 = vld [vmem:[%s4976_s3 + $0x4] ss:$8 sps:$4 sm:$0xff]  }
  0x3b   : > { %v3519_v25 = vld [vmem:[%s4976_s3 + $0x114] ss:$8 sps:$4 sm:$0xff]   ;;  %v3522_v27 = vld [vmem:[%s4976_s3 + $0x110] ss:$8 sps:$4 sm:$0xff]   ;;  %v3525_v29 = vld [vmem:[%s4976_s3 + $0x104] ss:$8 sps:$4 sm:$0xff]  }
  0x3c   : > { %1041 = vmatpush1.bf16.msra.mxu0 %v3497_v10  ;;  %v3527_v30 = vld [vmem:[%s4976_s3] ss:$8 sps:$4 sm:$0xff]   ;;  %v3529_v32 = vld [vmem:[%s4976_s3 + $0xf4] ss:$8 sps:$4 sm:$0xff]   ;;  %v3533_v34 = vld [vmem:[%s4976_s3 + $0xf0] ss:$8 sps:$4 sm:$0xff]  }
  0x3d   : > { %1114 = vmatpush1.bf16.msra.mxu1 %v3498_v11  ;;  %1042 = vmatprep.subr.bf16.mxu0 %v3499_v12  ;;  %v3528_v31 = vld [vmem:[%s4976_s3 + $0x100] ss:$8 sps:$4 sm:$0xff]   ;;  %v3531_v33 = vld [vmem:[%s4976_s3 + $0x1f4] ss:$8 sps:$4 sm:$0xff]   ;;  %v3534_v35 = vld [vmem:[%s4976_s3 + $0x1f0] ss:$8 sps:$4 sm:$0xff]  }
  0x3e   : > { %1115 = vmatprep.subr.bf16.mxu1 %v3501_v13  ;;  %v3535_v36 = vld [vmem:[%s4976_s3 + $0xe4] ss:$8 sps:$4 sm:$0xff]   ;;  %v3539_v38 = vld [vmem:[%s4976_s3 + $0xe0] ss:$8 sps:$4 sm:$0xff]   ;;  %v3541_v40 = vld [vmem:[%s4976_s3 + $0xd4] ss:$8 sps:$4 sm:$0xff]  }
  0x3f   : > { %v3537_v37 = vld [vmem:[%s4976_s3 + $0x1e4] ss:$8 sps:$4 sm:$0xff]   ;;  %v3540_v39 = vld [vmem:[%s4976_s3 + $0x1e0] ss:$8 sps:$4 sm:$0xff]   ;;  %v3543_v41 = vld [vmem:[%s4976_s3 + $0x1d4] ss:$8 sps:$4 sm:$0xff]  }
  0x40   : > { %1043 = vmatpush1.bf16.msra.mxu0 %v3503_v14  ;;  %v3545_v42 = vld [vmem:[%s4976_s3 + $0xd0] ss:$8 sps:$4 sm:$0xff]   ;;  %v3547_v44 = vld [vmem:[%s4976_s3 + $0xc4] ss:$8 sps:$4 sm:$0xff]   ;;  %v3551_v46 = vld [vmem:[%s4976_s3 + $0xc0] ss:$8 sps:$4 sm:$0xff]  }
  0x41   : > { %1116 = vmatpush1.bf16.msra.mxu1 %v3504_v15  ;;  %1044 = vmatprep.subr.bf16.mxu0 %v3505_v16  ;;  %v3546_v43 = vld [vmem:[%s4976_s3 + $0x1d0] ss:$8 sps:$4 sm:$0xff]   ;;  %v3549_v45 = vld [vmem:[%s4976_s3 + $0x1c4] ss:$8 sps:$4 sm:$0xff]   ;;  %v3552_v47 = vld [vmem:[%s4976_s3 + $0x1c0] ss:$8 sps:$4 sm:$0xff]   ;;  %v626_v16 = vlaneseq }
  0x42   : > { %1117 = vmatprep.subr.bf16.mxu1 %v3507_v17  ;;  %v3553_v48 = vld [vmem:[%s4976_s3 + $0xb4] ss:$8 sps:$4 sm:$0xff]   ;;  %v3557_v52 = vld [vmem:[%s4976_s3 + $0xb0] ss:$8 sps:$4 sm:$0xff]   ;;  %v3559_v54 = vld [vmem:[%s4976_s3 + $0xa4] ss:$8 sps:$4 sm:$0xff]  }
  0x43   : > { %v3579_v49 = vld [vmem:[%s4053_s24 + $0x4] ss:$16 sps:$4 sm:$0xff]   ;;  %v3582_v51 = vld [vmem:[%s4053_s24 + $0xc] ss:$16 sps:$4 sm:$0xff]   ;;  %v3558_v53 = vld [vmem:[%s4976_s3 + $0x1b0] ss:$8 sps:$4 sm:$0xff]  }
  0x44   : > { %1045 = vmatpush1.bf16.msra.mxu0 %v3509_v18  ;;  %v3555_v50 = vld [vmem:[%s4976_s3 + $0x1b4] ss:$8 sps:$4 sm:$0xff]   ;;  %1068 = vmatprep.mubr.bf16.mxu0 %v3579_v49  ;;  %v3561_v55 = vld [vmem:[%s4976_s3 + $0x1a4] ss:$8 sps:$4 sm:$0xff]   ;;  %v3563_v56 = vld [vmem:[%s4976_s3 + $0xa0] ss:$8 sps:$4 sm:$0xff]  }
  0x45   : > { %1118 = vmatpush1.bf16.msra.mxu1 %v3510_v19  ;;  %1046 = vmatprep.subr.bf16.mxu0 %v3511_v20  ;;  %v3564_v57 = vld [vmem:[%s4976_s3 + $0x1a0] ss:$8 sps:$4 sm:$0xff]   ;;  %v3565_v58 = vld [vmem:[%s4976_s3 + $0x94] ss:$8 sps:$4 sm:$0xff]   ;;  %v3569_v60 = vld [vmem:[%s4976_s3 + $0x90] ss:$8 sps:$4 sm:$0xff]  }
  0x46   : > { %1119 = vmatprep.subr.bf16.mxu1 %v3513_v21  ;;  %1141 = vmatprep.mubr.bf16.mxu1 %v3582_v51  ;;  %v3567_v59 = vld [vmem:[%s4976_s3 + $0x194] ss:$8 sps:$4 sm:$0xff]   ;;  %v3570_v61 = vld [vmem:[%s4976_s3 + $0x190] ss:$8 sps:$4 sm:$0xff]   ;;  %v3571_v62 = vld [vmem:[%s4976_s3 + $0x84] ss:$8 sps:$4 sm:$0xff]  }
  0x47   : > { %v3573_v63 = vld [vmem:[%s4976_s3 + $0x184] ss:$8 sps:$4 sm:$0xff]   ;;  %v3575_v0 = vld [vmem:[%s4976_s3 + $0x80] ss:$8 sps:$4 sm:$0xff]   ;;  %v627_v17 = vshrl.u32 %v626_v16, 7 }
  0x48   : > { %1047 = vmatpush1.bf16.msra.mxu0 %v3515_v22  ;;  %v3576_v1 = vld [vmem:[%s4976_s3 + $0x180] ss:$8 sps:$4 sm:$0xff]   ;;  %v3583_v4 = vld [vmem:[%s4053_s24 + $0x24] ss:$16 sps:$4 sm:$0xff]   ;;  %v3585_v5 = vld [vmem:[%s4053_s24 + $0x2c] ss:$16 sps:$4 sm:$0xff]  }
  0x49   : > { %1120 = vmatpush1.bf16.msra.mxu1 %v3516_v23  ;;  %1048 = vmatprep.subr.bf16.mxu0 %v3517_v24  ;;  %v3577_v2 = vld [vmem:[%s4053_s24] ss:$16 sps:$4 sm:$0xff]   ;;  %v3580_v3 = vld [vmem:[%s4053_s24 + $0x8] ss:$16 sps:$4 sm:$0xff]   ;;  %v3589_v8 = vld [vmem:[%s4053_s24 + $0x44] ss:$16 sps:$4 sm:$0xff]  }
  0x4a   : > { %1121 = vmatprep.subr.bf16.mxu1 %v3519_v25  ;;  %v3587_v6 = vld [vmem:[%s4053_s24 + $0x20] ss:$16 sps:$4 sm:$0xff]   ;;  %v3588_v7 = vld [vmem:[%s4053_s24 + $0x28] ss:$16 sps:$4 sm:$0xff]   ;;  %v3591_v9 = vld [vmem:[%s4053_s24 + $0x4c] ss:$16 sps:$4 sm:$0xff]  }
  0x4b   : > { %v3593_v10 = vld [vmem:[%s4053_s24 + $0x40] ss:$16 sps:$4 sm:$0xff]   ;;  %v3594_v11 = vld [vmem:[%s4053_s24 + $0x48] ss:$16 sps:$4 sm:$0xff]   ;;  %v3595_v12 = vld [vmem:[%s4053_s24 + $0x64] ss:$16 sps:$4 sm:$0xff]  }
  0x4c   : > { %1049 = vmatpush1.bf16.msra.mxu0 %v3521_v26  ;;  %v3597_v13 = vld [vmem:[%s4053_s24 + $0x6c] ss:$16 sps:$4 sm:$0xff]   ;;  %v3599_v14 = vld [vmem:[%s4053_s24 + $0x60] ss:$16 sps:$4 sm:$0xff]   ;;  %v3600_v15 = vld [vmem:[%s4053_s24 + $0x68] ss:$16 sps:$4 sm:$0xff]  }
  0x4d   : > { %1122 = vmatpush1.bf16.msra.mxu1 %v3522_v27  ;;  %1050 = vmatprep.subr.bf16.mxu0 %v3523_v28  ;;  %v628_v18 = vsub.s32 0, %v627_v17  ;;  %v624_v19 = vld [vmem:[%s4981_s8] sm:$0x3]  ;;  %v632_v20 = vsub.s32 1, %v627_v17 }
  0x4e   : > { %1123 = vmatprep.subr.bf16.mxu1 %v3525_v29 }
  0x4f   : > { %v4284_v21 = vrot.slane %v624_v19, %v628_v18  ;;  %v4286_v22 = vrot.slane %v624_v19, %v632_v20 }
  0x50   : > { %1051 = vmatpush1.bf16.msra.mxu0 %v3527_v30 }
  0x51   : > { %1124 = vmatpush1.bf16.msra.mxu1 %v3528_v31  ;;  %1052 = vmatprep.subr.bf16.mxu0 %v3529_v32 }
  0x52   : > { %1125 = vmatprep.subr.bf16.mxu1 %v3531_v33 }
  0x54   : > { %1053 = vmatpush2.bf16.msra.mxu0 %v3533_v34 }
  0x55   : > { %1126 = vmatpush2.bf16.msra.mxu1 %v3534_v35  ;;  %1054 = vmatprep.subr.bf16.mxu0 %v3535_v36 }
  0x56   : > { %1127 = vmatprep.subr.bf16.mxu1 %v3537_v37 }
  0x58   : > { %1055 = vmatpush2.bf16.msra.mxu0 %v3539_v38 }
  0x59   : > { %1128 = vmatpush2.bf16.msra.mxu1 %v3540_v39  ;;  %1056 = vmatprep.subr.bf16.mxu0 %v3541_v40 }
  0x5a   : > { %1129 = vmatprep.subr.bf16.mxu1 %v3543_v41 }
  0x5c   : > { %1057 = vmatpush2.bf16.msra.mxu0 %v3545_v42 }
  0x5d   : > { %1130 = vmatpush2.bf16.msra.mxu1 %v3546_v43  ;;  %1058 = vmatprep.subr.bf16.mxu0 %v3547_v44 }
  0x5e   : > { %1131 = vmatprep.subr.bf16.mxu1 %v3549_v45 }
  0x60   : > { %1059 = vmatpush2.bf16.msra.mxu0 %v3551_v46 }
  0x61   : > { %1132 = vmatpush2.bf16.msra.mxu1 %v3552_v47  ;;  %1060 = vmatprep.subr.bf16.mxu0 %v3553_v48 }
  0x62   : > { %1133 = vmatprep.subr.bf16.mxu1 %v3555_v50 }
  0x64   : > { %1061 = vmatpush2.bf16.msra.mxu0 %v3557_v52 }
  0x65   : > { %1134 = vmatpush2.bf16.msra.mxu1 %v3558_v53  ;;  %1062 = vmatprep.subr.bf16.mxu0 %v3559_v54 }
  0x66   : > { %1135 = vmatprep.subr.bf16.mxu1 %v3561_v55 }
  0x68   : > { %1063 = vmatpush2.bf16.msra.mxu0 %v3563_v56 }
  0x69   : > { %1136 = vmatpush2.bf16.msra.mxu1 %v3564_v57  ;;  %1064 = vmatprep.subr.bf16.mxu0 %v3565_v58 }
  0x6a   : > { %1137 = vmatprep.subr.bf16.mxu1 %v3567_v59 }
  0x6c   : > { %1065 = vmatpush2.bf16.msra.mxu0 %v3569_v60 }
  0x6d   : > { %1138 = vmatpush2.bf16.msra.mxu1 %v3570_v61  ;;  %1066 = vmatprep.subr.bf16.mxu0 %v3571_v62 }
  0x6e   : > { %1139 = vmatprep.subr.bf16.mxu1 %v3573_v63 }
  0x70   : > { %1067 = vmatpush2.bf16.msra.mxu0 %v3575_v0 }
  0x71   : > { %1140 = vmatpush2.bf16.msra.mxu1 %v3576_v1 }
  0x73   : > { %1069 = vmatmul.mubr.bf16.vlgmr.msra.gmra.mxu0 %v3577_v2 }
  0x74   : > { %1142 = vmatmul.mubr.bf16.vlgmr.msra.gmra.mxu1 %v3580_v3  ;;  %1078 = vmatprep.mubr.bf16.mxu0 %v3583_v4 }
  0x75   : > { %1151 = vmatprep.mubr.bf16.mxu1 %v3585_v5 }
  0x7b   : > { %1079 = vmatmul.mubr.bf16.gmra.mxu0 %v3587_v6 }
  0x7c   : > { %1152 = vmatmul.mubr.bf16.gmra.mxu1 %v3588_v7  ;;  %1088 = vmatprep.mubr.bf16.mxu0 %v3589_v8 }
  0x7d   : > { %1161 = vmatprep.mubr.bf16.mxu1 %v3591_v9 }
  0x83   : > { %1089 = vmatmul.mubr.bf16.gmra.mxu0 %v3593_v10 }
  0x84   : > { %1162 = vmatmul.mubr.bf16.gmra.mxu1 %v3594_v11  ;;  %1098 = vmatprep.mubr.bf16.mxu0 %v3595_v12 }
  0x85   : > { %1171 = vmatprep.mubr.bf16.mxu1 %v3597_v13 }
  0x8b   : > { %1099 = vmatmul.mubr.bf16.gmra.mxu0 %v3599_v14 }
  0x8c   : > { %1172 = vmatmul.mubr.bf16.gmra.mxu1 %v3600_v15 }
 0x133   : > { %v1070_v23 = vpop.f32.mrf.mxu0 }
 0x134   : > { %v1143_v24 = vpop.f32.mrf.mxu1  ;;  %v1071_v25 = vadd.f32 %v1070_v23, %v4284_v21 }
 0x135   : > { %v1072_v26 = vpop.f32.mrf.mxu0 }
 0x136   : > { %v1145_v27 = vpop.f32.mrf.mxu1  ;;  %v1073_v28 = vadd.f32 %v1072_v26, %v4286_v22  ;;  %v1144_v31 = vadd.f32 %v1143_v24, %v1071_v25 }
 0x137   : > { %v1074_v29 = vpop.f32.mrf.mxu0 }
 0x138   : > { %v1147_v30 = vpop.f32.mrf.mxu1  ;;  %v1146_v32 = vadd.f32 %v1145_v27, %v1073_v28  ;;  %v1075_v33 = vadd.f32 %v1074_v29, %v4284_v21 }
 0x139   : > { %v1076_v34 = vpop.f32.mrf.mxu0 }
 0x13a   : > { %v1149_v35 = vpop.f32.mrf.mxu1  ;;  %v3318_v36 = vpack.c.bf16 %v1146_v32, %v1144_v31  ;;  %v1077_v37 = vadd.f32 %v1076_v34, %v4286_v22  ;;  %v1148_v40 = vadd.f32 %v1147_v30, %v1075_v33 }
 0x13b   : > { %v1080_v38 = vpop.f32.mrf.mxu0 }
 0x13c   : > { %v1153_v39 = vpop.f32.mrf.mxu1  ;;  %1230 = vst [vmem:[#allocation2 + $0x30] sm:$0xff] %v3318_v36  ;;  %v1150_v41 = vadd.f32 %v1149_v35, %v1077_v37  ;;  %v1081_v42 = vadd.f32 %v1080_v38, %v4284_v21 }
 0x13d   : > { %v1082_v43 = vpop.f32.mrf.mxu0 }
 0x13e   : > { %v1155_v44 = vpop.f32.mrf.mxu1  ;;  %v3319_v45 = vpack.c.bf16 %v1150_v41, %v1148_v40  ;;  %v1083_v46 = vadd.f32 %v1082_v43, %v4286_v22  ;;  %v1154_v49 = vadd.f32 %v1153_v39, %v1081_v42 }
 0x13f   : > { %v1084_v47 = vpop.f32.mrf.mxu0 }
 0x140   : > { %v1157_v48 = vpop.f32.mrf.mxu1  ;;  %1231 = vst [vmem:[#allocation2] sm:$0xff] %v3319_v45  ;;  %v1156_v50 = vadd.f32 %v1155_v44, %v1083_v46  ;;  %v1085_v51 = vadd.f32 %v1084_v47, %v4284_v21 }
 0x141   : > { %v1086_v52 = vpop.f32.mrf.mxu0 }
 0x142   : > { %v1159_v53 = vpop.f32.mrf.mxu1  ;;  %v3320_v54 = vpack.c.bf16 %v1156_v50, %v1154_v49  ;;  %v1087_v55 = vadd.f32 %v1086_v52, %v4286_v22  ;;  %v1158_v58 = vadd.f32 %v1157_v48, %v1085_v51 }
 0x143   : > { %v1090_v56 = vpop.f32.mrf.mxu0 }
 0x144   : > { %v1163_v57 = vpop.f32.mrf.mxu1  ;;  %1232 = vst [vmem:[#allocation2 + $0x18] sm:$0xff] %v3320_v54  ;;  %v1160_v59 = vadd.f32 %v1159_v53, %v1087_v55  ;;  %v1091_v60 = vadd.f32 %v1090_v56, %v4284_v21 }
 0x145   : > { %v1092_v61 = vpop.f32.mrf.mxu0 }
 0x146   : > { %v1165_v62 = vpop.f32.mrf.mxu1  ;;  %v3321_v63 = vpack.c.bf16 %v1160_v59, %v1158_v58  ;;  %v1093_v0 = vadd.f32 %v1092_v61, %v4286_v22  ;;  %v1164_v3 = vadd.f32 %v1163_v57, %v1091_v60 }
 0x147   : > { %v1094_v1 = vpop.f32.mrf.mxu0 }
 0x148   : > { %v1167_v2 = vpop.f32.mrf.mxu1  ;;  %1233 = vst [vmem:[#allocation2 + $0x10] sm:$0xff] %v3321_v63  ;;  %v1166_v4 = vadd.f32 %v1165_v62, %v1093_v0  ;;  %v1095_v5 = vadd.f32 %v1094_v1, %v4284_v21 }
 0x149   : > { %v1096_v6 = vpop.f32.mrf.mxu0 }
 0x14a   : > { %v1169_v7 = vpop.f32.mrf.mxu1  ;;  %v3322_v8 = vpack.c.bf16 %v1166_v4, %v1164_v3  ;;  %v1097_v9 = vadd.f32 %v1096_v6, %v4286_v22  ;;  %v1168_v12 = vadd.f32 %v1167_v2, %v1095_v5 }
 0x14b   : > { %v1100_v10 = vpop.f32.mrf.mxu0 }
 0x14c   : > { %v1173_v11 = vpop.f32.mrf.mxu1  ;;  %1234 = vst [vmem:[#allocation2 + $0x8] sm:$0xff] %v3322_v8  ;;  %v1170_v13 = vadd.f32 %v1169_v7, %v1097_v9  ;;  %v1101_v14 = vadd.f32 %v1100_v10, %v4284_v21 }
 0x14d   : > { %v1102_v15 = vpop.f32.mrf.mxu0 }
 0x14e   : > { %v1175_v16 = vpop.f32.mrf.mxu1  ;;  %v3323_v17 = vpack.c.bf16 %v1170_v13, %v1168_v12  ;;  %v1103_v18 = vadd.f32 %v1102_v15, %v4286_v22  ;;  %v1174_v23 = vadd.f32 %v1173_v11, %v1101_v14 }
 0x14f   : > { %v1104_v19 = vpop.f32.mrf.mxu0 }
 0x150   : > { %v1177_v20 = vpop.f32.mrf.mxu1  ;;  %1235 = vst [vmem:[#allocation2 + $0x20] sm:$0xff] %v3323_v17  ;;  %v1176_v24 = vadd.f32 %v1175_v16, %v1103_v18  ;;  %v1105_v25 = vadd.f32 %v1104_v19, %v4284_v21 }
 0x151   : > { %v1106_v26 = vpop.f32.mrf.mxu0 }
 0x152   : > { %v3324_v27 = vpack.c.bf16 %v1176_v24, %v1174_v23  ;;  %v1107_v28 = vadd.f32 %v1106_v26, %v4286_v22  ;;  %v1179_v29 = vpop.f32.mrf.mxu1  ;;  %v1178_v30 = vadd.f32 %v1177_v20, %v1105_v25 }
 0x154   : > { %1236 = vst [vmem:[#allocation2 + $0x28] sm:$0xff] %v3324_v27  ;;  %v1180_v31 = vadd.f32 %v1179_v29, %v1107_v28 }
 0x156   : > { %v3325_v32 = vpack.c.bf16 %v1180_v31, %v1178_v30 }
 0x158   : > { %1237 = vst [vmem:[#allocation2 + $0x38] sm:$0xff] %v3325_v32 }
 0x159 PF: > { %v3899_v35 = vmov 0   ;;  %v3604_v36 = vld [vmem:[#allocation2 + $0xc] ss:$24 sps:$4 sm:$0xff]   ;;  %v3606_v21 = vld [vmem:[#allocation2 + $0x8] ss:$24 sps:$4 sm:$0xff]   ;;  %vm1342_vm0 = vcmask 523264  }
 0x15a   : > { %1399 = vmatprep.mubr.bf16.mxu0 %v3899_v35  ;;  %v3607_v37 = vld [vmem:[#allocation2 + $0x1c] ss:$-8 sps:$4 sm:$0xff]   ;;  %v3609_v22 = vld [vmem:[#allocation2 + $0x18] ss:$-8 sps:$4 sm:$0xff]   ;;  %v3613_v40 = vld [vmem:[%s4058_s21] sm:$0xff]   ;;  %s5022_s12 = sld [smem:[#allocation18_spill]] }
 0x15b   : > { %v3610_v38 = vld [vmem:[#allocation2 + $0x34] ss:$-48 sps:$4 sm:$0xff]   ;;  %v3612_v39 = vld [vmem:[#allocation2 + $0x30] ss:$-48 sps:$4 sm:$0xff]   ;;  %v3614_v49 = vld [vmem:[%s4058_s21 + $0x8] sm:$0xff]   ;;  %s5023_s7 = sld [smem:[#allocation19_spill]] }
 0x15c   : > { %v3621_v41 = vld [vmem:[%s4978_s5 + $0x74] ss:$8 sps:$4 sm:$0xff]   ;;  %v3623_v42 = vld [vmem:[%s4978_s5 + $0x70] ss:$8 sps:$4 sm:$0xff]   ;;  %v3624_v43 = vld [vmem:[%s4978_s5 + $0x64] ss:$8 sps:$4 sm:$0xff]  }
 0x15d   : > { %v3626_v44 = vld [vmem:[%s4978_s5 + $0x60] ss:$8 sps:$4 sm:$0xff]   ;;  %1816 = vmatprep.subr.bf16.mxu1 %v3621_v41  ;;  %v3627_v45 = vld [vmem:[%s4977_s4 + $0x70] ss:$8 sps:$4 sm:$0xff]   ;;  %v3629_v46 = vld [vmem:[%s4977_s4 + $0x74] ss:$8 sps:$4 sm:$0xff]  }
 0x15e   : > { %1817 = vmatpush1.bf16.msra.mxu1 %v3623_v42  ;;  %v3630_v47 = vld [vmem:[%s4978_s5 + $0x54] ss:$8 sps:$4 sm:$0xff]   ;;  %v3635_v48 = vld [vmem:[%s4977_s4 + $0x64] ss:$8 sps:$4 sm:$0xff]   ;;  %v3633_v50 = vld [vmem:[%s4977_s4 + $0x60] ss:$8 sps:$4 sm:$0xff]  }
 0x15f   : > { %v3601_v33 = vld [vmem:[#allocation2 + $0x2c] ss:$16 sps:$4 sm:$0xff]   ;;  %v3603_v34 = vld [vmem:[#allocation2 + $0x28] ss:$16 sps:$4 sm:$0xff]   ;;  %1818 = vmatprep.subr.bf16.mxu1 %v3624_v43  ;;  %v3615_v61 = vld [vmem:[%s4058_s21 + $0x10] sm:$0xff]   ;;  %s5025_s24 = sld [smem:[#allocation9_spill]] }
 0x160   : > { %1375 = vmatprep.subr.bf16.mxu0 %v3601_v33  ;;  %v3632_v51 = vld [vmem:[%s4978_s5 + $0x50] ss:$8 sps:$4 sm:$0xff]   ;;  %v3636_v52 = vld [vmem:[%s4978_s5 + $0x44] ss:$8 sps:$4 sm:$0xff]   ;;  %v3641_v53 = vld [vmem:[%s4977_s4 + $0x54] ss:$8 sps:$4 sm:$0xff]  }
 0x161   : > { %1376 = vmatpush1.bf16.msra.mxu0 %v3603_v34  ;;  %v3638_v54 = vld [vmem:[%s4978_s5 + $0x40] ss:$8 sps:$4 sm:$0xff]   ;;  %v3639_v55 = vld [vmem:[%s4977_s4 + $0x50] ss:$8 sps:$4 sm:$0xff]   ;;  %v3647_v56 = vld [vmem:[%s4977_s4 + $0x44] ss:$8 sps:$4 sm:$0xff]  }
 0x162   : > { %1377 = vmatprep.subr.bf16.mxu0 %v3604_v36  ;;  %1819 = vmatpush1.bf16.msra.mxu1 %v3626_v44  ;;  %v3642_v57 = vld [vmem:[%s4978_s5 + $0x34] ss:$8 sps:$4 sm:$0xff]   ;;  %v3644_v58 = vld [vmem:[%s4978_s5 + $0x30] ss:$8 sps:$4 sm:$0xff]   ;;  %v3645_v59 = vld [vmem:[%s4977_s4 + $0x40] ss:$8 sps:$4 sm:$0xff]  }
 0x163   : > { %1820 = vmatprep.subr.bf16.mxu1 %v3630_v47  ;;  %v3653_v60 = vld [vmem:[%s4977_s4 + $0x34] ss:$8 sps:$4 sm:$0xff]   ;;  %v3648_v62 = vld [vmem:[%s4978_s5 + $0x24] ss:$8 sps:$4 sm:$0xff]   ;;  %v3650_v63 = vld [vmem:[%s4978_s5 + $0x20] ss:$8 sps:$4 sm:$0xff]  }
 0x164   : > { %v3651_v0 = vld [vmem:[%s4977_s4 + $0x30] ss:$8 sps:$4 sm:$0xff]   ;;  %v3659_v1 = vld [vmem:[%s4977_s4 + $0x24] ss:$8 sps:$4 sm:$0xff]   ;;  %v3654_v2 = vld [vmem:[%s4978_s5 + $0x14] ss:$8 sps:$4 sm:$0xff]  }
 0x165   : > { %1378 = vmatpush1.bf16.msra.mxu0 %v3606_v21  ;;  %v3656_v3 = vld [vmem:[%s4978_s5 + $0x10] ss:$8 sps:$4 sm:$0xff]   ;;  %v3657_v4 = vld [vmem:[%s4977_s4 + $0x20] ss:$8 sps:$4 sm:$0xff]   ;;  %v3665_v5 = vld [vmem:[%s4977_s4 + $0x14] ss:$8 sps:$4 sm:$0xff]  }
 0x166   : > { %1379 = vmatprep.subr.bf16.mxu0 %v3607_v37  ;;  %1821 = vmatpush1.bf16.msra.mxu1 %v3632_v51  ;;  %v3616_v6 = vld [vmem:[%s4058_s21 + $0x18] sm:$0xff]   ;;  %v3660_v7 = vld [vmem:[%s4978_s5 + $0x4] ss:$8 sps:$4 sm:$0xff]   ;;  %v3662_v8 = vld [vmem:[%s4978_s5] ss:$8 sps:$4 sm:$0xff]   ;;  %s3326_s27 = sshll.u32 %s3881_s28, 5 }
 0x167   : > { %1822 = vmatprep.subr.bf16.mxu1 %v3636_v52  ;;  %v3663_v9 = vld [vmem:[%s4977_s4 + $0x10] ss:$8 sps:$4 sm:$0xff]   ;;  %v3671_v10 = vld [vmem:[%s4977_s4 + $0x4] ss:$8 sps:$4 sm:$0xff]   ;;  %v3666_v11 = vld [vmem:[%s4978_s5 + $0xf4] ss:$8 sps:$4 sm:$0xff]  }
 0x168   : > { %v3668_v12 = vld [vmem:[%s4978_s5 + $0xf0] ss:$8 sps:$4 sm:$0xff]   ;;  %v3669_v13 = vld [vmem:[%s4977_s4] ss:$8 sps:$4 sm:$0xff]   ;;  %v3677_v14 = vld [vmem:[%s4977_s4 + $0xf4] ss:$8 sps:$4 sm:$0xff]  }
 0x169   : > { %1380 = vmatpush1.bf16.msra.mxu0 %v3609_v22  ;;  %v3617_v15 = vld [vmem:[%s4058_s21 + $0x20] sm:$0xff]   ;;  %v3675_v18 = vld [vmem:[%s4977_s4 + $0xf0] ss:$8 sps:$4 sm:$0xff]   ;;  %v3678_v20 = vld [vmem:[%s4978_s5 + $0xd4] ss:$8 sps:$4 sm:$0xff]   ;;  %s3313_s9 = sshll.u32 %s5025_s24, 6 }
 0x16a   : > { %1381 = vmatprep.subr.bf16.mxu0 %v3610_v38  ;;  %1823 = vmatpush1.bf16.msra.mxu1 %v3638_v54  ;;  %v3672_v16 = vld [vmem:[%s4978_s5 + $0xe4] ss:$8 sps:$4 sm:$0xff]   ;;  %v3674_v17 = vld [vmem:[%s4978_s5 + $0xe0] ss:$8 sps:$4 sm:$0xff]   ;;  %v3680_v23 = vld [vmem:[%s4978_s5 + $0xd0] ss:$8 sps:$4 sm:$0xff]   ;;  %s2898_s10 = sadd.s32 %s3326_s27, %s3313_s9 }
 0x16b   : > { %1824 = vmatprep.subr.bf16.mxu1 %v3642_v57  ;;  %v3683_v19 = vld [vmem:[%s4977_s4 + $0xe4] ss:$8 sps:$4 sm:$0xff]   ;;  %v3681_v24 = vld [vmem:[%s4977_s4 + $0xe0] ss:$8 sps:$4 sm:$0xff]   ;;  %v3689_v25 = vld [vmem:[%s4977_s4 + $0xd4] ss:$8 sps:$4 sm:$0xff]  }
 0x16c   : > { %v3618_v26 = vld [vmem:[%s4058_s21 + $0x28] sm:$0xff]   ;;  %v3687_v28 = vld [vmem:[%s4977_s4 + $0xd0] ss:$8 sps:$4 sm:$0xff]   ;;  %v3690_v31 = vld [vmem:[%s4978_s5 + $0xb4] ss:$8 sps:$4 sm:$0xff]   ;;  %s2901_s25 = sshll.u32 %s4070_s14, 4  ;;  %s4881_s25 = int_to_ptr.vmem [resolvable:$true] %s2901_s25 }
 0x16d   : > { %1382 = vmatpush1.bf16.msra.mxu0 %v3612_v39  ;;  %v3684_v27 = vld [vmem:[%s4978_s5 + $0xc4] ss:$8 sps:$4 sm:$0xff]   ;;  %v3686_v29 = vld [vmem:[%s4978_s5 + $0xc0] ss:$8 sps:$4 sm:$0xff]   ;;  %v3692_v33 = vld [vmem:[%s4978_s5 + $0xb0] ss:$8 sps:$4 sm:$0xff]  }
 0x16e   : > { %2089 = vmatprep.subr.bf16.mxu0 %v3629_v46  ;;  %1825 = vmatpush1.bf16.msra.mxu1 %v3644_v58  ;;  %v3695_v30 = vld [vmem:[%s4977_s4 + $0xc4] ss:$8 sps:$4 sm:$0xff]   ;;  %v3693_v32 = vld [vmem:[%s4977_s4 + $0xc0] ss:$8 sps:$4 sm:$0xff]   ;;  %v3701_v34 = vld [vmem:[%s4977_s4 + $0xb4] ss:$8 sps:$4 sm:$0xff]  }
 0x16f   : > { %1826 = vmatprep.subr.bf16.mxu1 %v3648_v62  ;;  %v3619_v36 = vld [vmem:[%s4058_s21 + $0x30] sm:$0xff]   ;;  %v3696_v21 = vld [vmem:[%s4978_s5 + $0xa4] ss:$8 sps:$4 sm:$0xff]   ;;  %v3698_v22 = vld [vmem:[%s4978_s5 + $0xa0] ss:$8 sps:$4 sm:$0xff]   ;;  %s5028_s18 = sld [smem:[#allocation22_spill]] }
 0x170   : > { %3173 = vmatmul.mubr.msk.bf16.vlgmr.msra.gmra.mxu0 %vm1342_vm0, %v3613_v40  ;;  %v3699_v37 = vld [vmem:[%s4977_s4 + $0xb0] ss:$8 sps:$4 sm:$0xff]   ;;  %v3707_v38 = vld [vmem:[%s4977_s4 + $0xa4] ss:$8 sps:$4 sm:$0xff]   ;;  %v3702_v39 = vld [vmem:[%s4978_s5 + $0x94] ss:$8 sps:$4 sm:$0xff]  }
 0x171   : > { %1409 = vmatprep.mubr.bf16.mxu0 %v3899_v35  ;;  %2090 = vmatpush1.bf16.msra.mxu0 %v3627_v45  ;;  %v3705_v40 = vld [vmem:[%s4977_s4 + $0xa0] ss:$8 sps:$4 sm:$0xff]   ;;  %v3704_v41 = vld [vmem:[%s4978_s5 + $0x90] ss:$8 sps:$4 sm:$0xff]   ;;  %v3708_v43 = vld [vmem:[%s4978_s5 + $0x84] ss:$8 sps:$4 sm:$0xff]  }
 0x172   : > { %2091 = vmatprep.subr.bf16.mxu0 %v3635_v48  ;;  %1827 = vmatpush1.bf16.msra.mxu1 %v3650_v63  ;;  %v3620_v42 = vld [vmem:[%s4058_s21 + $0x38] sm:$0xff]   ;;  %v3716_v46 = vld [vmem:[%s4063_s29 + $0x4] ss:$8 sps:$4 sm:$0xff]   ;;  %v3714_v47 = vld [vmem:[%s4063_s29] ss:$8 sps:$4 sm:$0xff]   ;;  %s5026_s21 = sld [smem:[#allocation7_spill]] }
 0x173   : > { %1828 = vmatprep.subr.bf16.mxu1 %v3654_v2  ;;  %v3711_v44 = vld [vmem:[%s4977_s4 + $0x90] ss:$8 sps:$4 sm:$0xff]   ;;  %v3713_v45 = vld [vmem:[%s4977_s4 + $0x94] ss:$8 sps:$4 sm:$0xff]   ;;  %1848 = vmatprep.mubr.bf16.mxu1 %v3716_v46  ;;  %v3719_v48 = vld [vmem:[%s4977_s4 + $0x84] ss:$8 sps:$4 sm:$0xff]  }
 0x174   : > { %v3722_v51 = vld [vmem:[%s4063_s29 + $0x10] ss:$8 sps:$4 sm:$0xff]   ;;  %v3723_v52 = vld [vmem:[%s4063_s29 + $0x24] ss:$8 sps:$4 sm:$0xff]   ;;  %v3726_v54 = vld [vmem:[%s4063_s29 + $0x34] ss:$8 sps:$4 sm:$0xff]  }
 0x175   : > { %2092 = vmatpush1.bf16.msra.mxu0 %v3633_v50  ;;  %v3720_v50 = vld [vmem:[%s4063_s29 + $0x14] ss:$8 sps:$4 sm:$0xff]   ;;  %v3731_v57 = vld [vmem:[%s4063_s29 + $0x40] ss:$8 sps:$4 sm:$0xff]   ;;  %v3740_v63 = vld [vmem:[%s4063_s29 + $0x70] ss:$8 sps:$4 sm:$0xff]  }
 0x176   : > { %2093 = vmatprep.subr.bf16.mxu0 %v3641_v53  ;;  %1829 = vmatpush1.bf16.msra.mxu1 %v3656_v3  ;;  %v3725_v53 = vld [vmem:[%s4063_s29 + $0x20] ss:$8 sps:$4 sm:$0xff]   ;;  %v3732_v58 = vld [vmem:[%s4063_s29 + $0x54] ss:$8 sps:$4 sm:$0xff]   ;;  %v3746_v2 = vld [vmem:[%s4979_s6 + $0x64] ss:$8 sps:$4 sm:$0xff]  }
 0x177   : > { %1830 = vmatprep.subr.bf16.mxu1 %v3660_v7  ;;  %v3738_v62 = vld [vmem:[%s4063_s29 + $0x74] ss:$8 sps:$4 sm:$0xff]   ;;  %v3744_v3 = vld [vmem:[%s4979_s6 + $0x60] ss:$8 sps:$4 sm:$0xff]   ;;  %s3805_s23 = scalar_lea.vmem %s4881_s25, 4096  ;;  %s3900_s28 = smov [#allocation3]  }
 0x178   : > { %3174 = vmatmul.mubr.msk.bf16.gmra.mxu0 %vm1342_vm0, %v3614_v49  ;;  %v3717_v49 = vld [vmem:[%s4977_s4 + $0x80] ss:$8 sps:$4 sm:$0xff]   ;;  %s5029_s17 = sand.u32 1, %s5026_s21   ;;  %p3806_p1 = scmp.ne.s32.totalorder %s4881_s25, %s3805_s23 }
 0x179   : > { %1419 = vmatprep.mubr.bf16.mxu0 %v3899_v35  ;;  %2094 = vmatpush1.bf16.msra.mxu0 %v3639_v55  ;;  %v3728_v55 = vld [vmem:[%s4063_s29 + $0x30] ss:$8 sps:$4 sm:$0xff]   ;;  %v3750_v7 = vld [vmem:[%s4979_s6 + $0x40] ss:$8 sps:$4 sm:$0xff]   ;;  %s4885_s20 = scalar_lea.sflag [#allocation4], %s5029_s17 }
 0x17a   : > { %2095 = vmatprep.subr.bf16.mxu0 %v3647_v56  ;;  %1831 = vmatpush1.bf16.msra.mxu1 %v3662_v8  ;;  %v3729_v56 = vld [vmem:[%s4063_s29 + $0x44] ss:$8 sps:$4 sm:$0xff]   ;;  %v3755_v8 = vld [vmem:[%s4979_s6 + $0x34] ss:$8 sps:$4 sm:$0xff]   ;;  %p3807_p2 = pnand %p3806_p1, %p4024_p3 }
 0x17b   : > { %1832 = vmatprep.subr.bf16.mxu1 %v3666_v11  ;;  %v3756_v11 = vld [vmem:[%s4979_s6 + $0x20] ss:$8 sps:$4 sm:$0xff]  }
 0x17c   : > { %p3808_p4 = pneg %p3807_p2 }
 0x17d   : > { %2096 = vmatpush1.bf16.msra.mxu0 %v3645_v59  ;;  %v3734_v59 = vld [vmem:[%s4063_s29 + $0x50] ss:$8 sps:$4 sm:$0xff]  }
 0x17e   : > { %2097 = vmatprep.subr.bf16.mxu0 %v3653_v60  ;;  %1833 = vmatpush2.bf16.msra.mxu1 %v3668_v12  ;;  %v3735_v60 = vld [vmem:[%s4063_s29 + $0x64] ss:$8 sps:$4 sm:$0xff]   ;;  %v3761_v12 = vld [vmem:[%s4979_s6 + $0x14] ss:$8 sps:$4 sm:$0xff]  }
 0x17f   : > { %1834 = vmatprep.subr.bf16.mxu1 %v3672_v16  ;;  %v3767_v16 = vld [vmem:[%s4979_s6 + $0xf4] ss:$8 sps:$4 sm:$0xff]  }
 0x180   : > { %3175 = vmatmul.mubr.msk.bf16.gmra.mxu0 %vm1342_vm0, %v3615_v61  ;;  %v3737_v61 = vld [vmem:[%s4063_s29 + $0x60] ss:$8 sps:$4 sm:$0xff]   ;;  %s5024_s29 = sld [smem:[#allocation20_spill]] }
 0x181   : > { %1429 = vmatprep.mubr.bf16.mxu0 %v3899_v35  ;;  %2098 = vmatpush1.bf16.msra.mxu0 %v3651_v0  ;;  %v3741_v0 = vld [vmem:[%s4979_s6 + $0x70] ss:$8 sps:$4 sm:$0xff]  }
 0x182   : > { %2099 = vmatprep.subr.bf16.mxu0 %v3659_v1  ;;  %1835 = vmatpush2.bf16.msra.mxu1 %v3674_v17  ;;  %v3743_v1 = vld [vmem:[%s4979_s6 + $0x74] ss:$8 sps:$4 sm:$0xff]   ;;  %v3765_v17 = vld [vmem:[%s4979_s6 + $0xf0] ss:$8 sps:$4 sm:$0xff]  }
 0x183   : > { %1836 = vmatprep.subr.bf16.mxu1 %v3678_v20  ;;  %v3773_v20 = vld [vmem:[%s4979_s6 + $0xd4] ss:$8 sps:$4 sm:$0xff]  }
 0x185   : > { %2100 = vmatpush1.bf16.msra.mxu0 %v3657_v4  ;;  %v3749_v4 = vld [vmem:[%s4979_s6 + $0x54] ss:$8 sps:$4 sm:$0xff]  }
 0x186   : > { %2101 = vmatprep.subr.bf16.mxu0 %v3665_v5  ;;  %1837 = vmatpush2.bf16.msra.mxu1 %v3680_v23  ;;  %v3747_v5 = vld [vmem:[%s4979_s6 + $0x50] ss:$8 sps:$4 sm:$0xff]  }
 0x187   : > { %1838 = vmatprep.subr.bf16.mxu1 %v3684_v27  ;;  %v3771_v23 = vld [vmem:[%s4979_s6 + $0xd0] ss:$8 sps:$4 sm:$0xff]  }
 0x188   : > { %3176 = vmatmul.mubr.msk.bf16.gmra.mxu0 %vm1342_vm0, %v3616_v6  ;;  %v3752_v6 = vld [vmem:[%s4979_s6 + $0x44] ss:$8 sps:$4 sm:$0xff]   ;;  %v3777_v27 = vld [vmem:[%s4979_s6 + $0xb0] ss:$8 sps:$4 sm:$0xff]  }
 0x189   : > { %1439 = vmatprep.mubr.bf16.mxu0 %v3899_v35  ;;  %2102 = vmatpush1.bf16.msra.mxu0 %v3663_v9  ;;  %v3753_v9 = vld [vmem:[%s4979_s6 + $0x30] ss:$8 sps:$4 sm:$0xff]  }
 0x18a   : > { %2103 = vmatprep.subr.bf16.mxu0 %v3671_v10  ;;  %1839 = vmatpush2.bf16.msra.mxu1 %v3686_v29  ;;  %v3758_v10 = vld [vmem:[%s4979_s6 + $0x24] ss:$8 sps:$4 sm:$0xff]  }
 0x18b   : > { %1840 = vmatprep.subr.bf16.mxu1 %v3690_v31 }
 0x18d   : > { %2104 = vmatpush1.bf16.msra.mxu0 %v3669_v13  ;;  %v3759_v13 = vld [vmem:[%s4979_s6 + $0x10] ss:$8 sps:$4 sm:$0xff]  }
 0x18e   : > { %2105 = vmatprep.subr.bf16.mxu0 %v3677_v14  ;;  %1841 = vmatpush2.bf16.msra.mxu1 %v3692_v33  ;;  %v3764_v14 = vld [vmem:[%s4979_s6 + $0x4] ss:$8 sps:$4 sm:$0xff]  }
 0x18f   : > { %1842 = vmatprep.subr.bf16.mxu1 %v3696_v21 }
 0x190   : > { %3177 = vmatmul.mubr.msk.bf16.gmra.mxu0 %vm1342_vm0, %v3617_v15  ;;  %v3762_v15 = vld [vmem:[%s4979_s6] ss:$8 sps:$4 sm:$0xff]  }
 0x191   : > { %1449 = vmatprep.mubr.bf16.mxu0 %v3899_v35  ;;  %2106 = vmatpush2.bf16.msra.mxu0 %v3675_v18  ;;  %v3770_v18 = vld [vmem:[%s4979_s6 + $0xe4] ss:$8 sps:$4 sm:$0xff]  }
 0x192   : > { %2107 = vmatprep.subr.bf16.mxu0 %v3683_v19  ;;  %1843 = vmatpush2.bf16.msra.mxu1 %v3698_v22  ;;  %v3768_v19 = vld [vmem:[%s4979_s6 + $0xe0] ss:$8 sps:$4 sm:$0xff]  }
 0x193   : > { %1844 = vmatprep.subr.bf16.mxu1 %v3702_v39 }
 0x195   : > { %2108 = vmatpush2.bf16.msra.mxu0 %v3681_v24  ;;  %v3776_v24 = vld [vmem:[%s4979_s6 + $0xc4] ss:$8 sps:$4 sm:$0xff]  }
 0x196   : > { %2109 = vmatprep.subr.bf16.mxu0 %v3689_v25  ;;  %1845 = vmatpush2.bf16.msra.mxu1 %v3704_v41  ;;  %v3774_v25 = vld [vmem:[%s4979_s6 + $0xc0] ss:$8 sps:$4 sm:$0xff]  }
 0x197   : > { %1846 = vmatprep.subr.bf16.mxu1 %v3708_v43 }
 0x198   : > { %3178 = vmatmul.mubr.msk.bf16.gmra.mxu0 %vm1342_vm0, %v3618_v26  ;;  %v3779_v26 = vld [vmem:[%s4979_s6 + $0xb4] ss:$8 sps:$4 sm:$0xff]  }
 0x199   : > { %1459 = vmatprep.mubr.bf16.mxu0 %v3899_v35  ;;  %2110 = vmatpush2.bf16.msra.mxu0 %v3687_v28 }
 0x19a   : > { %2111 = vmatprep.subr.bf16.mxu0 %v3695_v30 }
 0x19d   : > { %2112 = vmatpush2.bf16.msra.mxu0 %v3693_v32 }
 0x19e   : > { %2113 = vmatprep.subr.bf16.mxu0 %v3701_v34 }
 0x1a0   : > { %3179 = vmatmul.mubr.msk.bf16.gmra.mxu0 %vm1342_vm0, %v3619_v36 }
 0x1a1   : > { %1469 = vmatprep.mubr.bf16.mxu0 %v3899_v35  ;;  %2114 = vmatpush2.bf16.msra.mxu0 %v3699_v37  ;;  %v3710_v35 = vld [vmem:[%s4978_s5 + $0x80] ss:$8 sps:$4 sm:$0xff]  }
 0x1a2   : > { %2115 = vmatprep.subr.bf16.mxu0 %v3707_v38  ;;  %1847 = vmatpush2.bf16.msra.mxu1 %v3710_v35 }
 0x1a3   : > { %2466 = vmatprep.subr.bf16.mxu1 %v3743_v1 }
 0x1a5   : > { %2116 = vmatpush2.bf16.msra.mxu0 %v3705_v40  ;;  %1849 = vmatmul.mubr.bf16.vlgmr.msra.gmra.mxu1 %v3714_v47 }
 0x1a6   : > { %2117 = vmatprep.subr.bf16.mxu0 %v3713_v45  ;;  %1858 = vmatprep.mubr.bf16.mxu1 %v3720_v50 }
 0x1a7   : > { %2467 = vmatpush1.bf16.msra.mxu1 %v3741_v0 }
 0x1a8   : > { %3180 = vmatmul.mubr.msk.bf16.gmra.mxu0 %vm1342_vm0, %v3620_v42  ;;  %2468 = vmatprep.subr.bf16.mxu1 %v3746_v2 }
 0x1a9   : > { %2118 = vmatpush2.bf16.msra.mxu0 %v3711_v44 }
 0x1aa   : > { %2119 = vmatprep.subr.bf16.mxu0 %v3719_v48 }
 0x1ab   : > { %2469 = vmatpush1.bf16.msra.mxu1 %v3744_v3 }
 0x1ac   : > { %2470 = vmatprep.subr.bf16.mxu1 %v3749_v4 }
 0x1ad   : > { %2120 = vmatpush2.bf16.msra.mxu0 %v3717_v49  ;;  %1859 = vmatmul.mubr.bf16.gmra.mxu1 %v3722_v51 }
 0x1ae   : > { %1868 = vmatprep.mubr.bf16.mxu1 %v3723_v52 }
 0x1af   : > { %2471 = vmatpush1.bf16.msra.mxu1 %v3747_v5 }
 0x1b0   : > { %2472 = vmatprep.subr.bf16.mxu1 %v3752_v6 }
 0x1b3   : > { %2473 = vmatpush1.bf16.msra.mxu1 %v3750_v7 }
 0x1b4   : > { %2474 = vmatprep.subr.bf16.mxu1 %v3755_v8 }
 0x1b5   : > { %1869 = vmatmul.mubr.bf16.gmra.mxu1 %v3725_v53 }
 0x1b6   : > { %1878 = vmatprep.mubr.bf16.mxu1 %v3726_v54 }
 0x1b7   : > { %2475 = vmatpush1.bf16.msra.mxu1 %v3753_v9 }
 0x1b8   : > { %2476 = vmatprep.subr.bf16.mxu1 %v3758_v10  ;;  %v3782_v10 = vld [vmem:[%s4979_s6 + $0xa4] ss:$8 sps:$4 sm:$0xff]  }
 0x1bb   : > { %2477 = vmatpush1.bf16.msra.mxu1 %v3756_v11  ;;  %v3780_v11 = vld [vmem:[%s4979_s6 + $0xa0] ss:$8 sps:$4 sm:$0xff]  }
 0x1bc   : > { %2478 = vmatprep.subr.bf16.mxu1 %v3761_v12  ;;  %v3785_v12 = vld [vmem:[%s4979_s6 + $0x94] ss:$8 sps:$4 sm:$0xff]  }
 0x1bd   : > { %1879 = vmatmul.mubr.bf16.gmra.mxu1 %v3728_v55 }
 0x1be   : > { %1888 = vmatprep.mubr.bf16.mxu1 %v3729_v56 }
 0x1bf   : > { %2479 = vmatpush1.bf16.msra.mxu1 %v3759_v13  ;;  %v3783_v13 = vld [vmem:[%s4979_s6 + $0x90] ss:$8 sps:$4 sm:$0xff]  }
 0x1c0   : > { %2480 = vmatprep.subr.bf16.mxu1 %v3764_v14  ;;  %v3788_v14 = vld [vmem:[%s4979_s6 + $0x84] ss:$8 sps:$4 sm:$0xff]  }
 0x1c3   : > { %2481 = vmatpush1.bf16.msra.mxu1 %v3762_v15  ;;  %v3786_v15 = vld [vmem:[%s4979_s6 + $0x80] ss:$8 sps:$4 sm:$0xff]  }
 0x1c4   : > { %2482 = vmatprep.subr.bf16.mxu1 %v3767_v16 }
 0x1c5   : > { %1889 = vmatmul.mubr.bf16.gmra.mxu1 %v3731_v57 }
 0x1c6   : > { %1898 = vmatprep.mubr.bf16.mxu1 %v3732_v58 }
 0x1c7   : > { %2483 = vmatpush2.bf16.msra.mxu1 %v3765_v17 }
 0x1c8   : > { %2484 = vmatprep.subr.bf16.mxu1 %v3770_v18  ;;  %v3789_v18 = vld [vmem:[%s5022_s12 + $0x78] sm:$0xff]  }
 0x1c9   : > { %3327 = vmatprep.subr.bf16.mxu0 %v3789_v18 }
 0x1cb   : > { %2485 = vmatpush2.bf16.msra.mxu1 %v3768_v19  ;;  %v4638_v19 = vld [vmem:[%s5022_s12 + $0x38] sm:$0xff]  }
 0x1cc   : > { %2486 = vmatprep.subr.bf16.mxu1 %v3773_v20  ;;  %v4643_v20 = vld [vmem:[%s5022_s12 + $0x70] sm:$0xff]  }
 0x1cd   : > { %1899 = vmatmul.mubr.bf16.gmra.mxu1 %v3734_v59 }
 0x1ce   : > { %1908 = vmatprep.mubr.bf16.mxu1 %v3735_v60 }
 0x1cf   : > { %2487 = vmatpush2.bf16.msra.mxu1 %v3771_v23  ;;  %v4649_v23 = vld [vmem:[%s5022_s12 + $0x30] sm:$0xff]  }
 0x1d0   : > { %2488 = vmatprep.subr.bf16.mxu1 %v3776_v24 }
 0x1d3   : > { %2489 = vmatpush2.bf16.msra.mxu1 %v3774_v25  ;;  %v4655_v25 = vld [vmem:[%s5022_s12 + $0x68] sm:$0xff]  }
 0x1d4   : > { %2490 = vmatprep.subr.bf16.mxu1 %v3779_v26  ;;  %v4661_v26 = vld [vmem:[%s5022_s12 + $0x28] sm:$0xff]  }
 0x1d5   : > { %1909 = vmatmul.mubr.bf16.gmra.mxu1 %v3737_v61 }
 0x1d6   : > { %1918 = vmatprep.mubr.bf16.mxu1 %v3738_v62 }
 0x1d7   : > { %2491 = vmatpush2.bf16.msra.mxu1 %v3777_v27 }
 0x1d8   : > { %2492 = vmatprep.subr.bf16.mxu1 %v3782_v10 }
 0x1db   : > { %2493 = vmatpush2.bf16.msra.mxu1 %v3780_v11 }
 0x1dc   : > { %2494 = vmatprep.subr.bf16.mxu1 %v3785_v12 }
 0x1dd   : > { %1919 = vmatmul.mubr.bf16.gmra.mxu1 %v3740_v63 }
 0x1df   : > { %2495 = vmatpush2.bf16.msra.mxu1 %v3783_v13 }
 0x1e0   : > { %2496 = vmatprep.subr.bf16.mxu1 %v3788_v14 }
 0x1e3   : > { %2497 = vmatpush2.bf16.msra.mxu1 %v3786_v15 }
 0x1e4   : > { %3391 = vmatprep.subr.bf16.mxu1 %v3789_v18 }
 0x230   : > { %v1401_v28 = vpop.f32.mrf.mxu0 }
 0x232   : > { %v1403_v29 = vpop.f32.mrf.mxu0 }
 0x234   : > { %v1405_v30 = vpop.f32.mrf.mxu0 }
 0x235   : > { %v1480_v33 = vpack.c.bf16 %v1405_v30, %v1401_v28  ;;  %v4667_v28 = vld [vmem:[%s5022_s12 + $0x60] sm:$0xff]  }
 0x236   : > { %v1407_v31 = vpop.f32.mrf.mxu0 }
 0x237   : > { %v1481_v32 = vpack.c.bf16 %v1407_v31, %v1403_v29  ;;  %v4673_v29 = vld [vmem:[%s5022_s12 + $0x20] sm:$0xff]   ;;  %v4679_v31 = vld [vmem:[%s5022_s12 + $0x58] sm:$0xff]  }
 0x238   : > { %v1411_v34 = vpop.f32.mrf.mxu0 }
 0x239   : > { %2121 = vmatprep.mubr.bf16.mxu0 %v1481_v32  ;;  %v4685_v32 = vld [vmem:[%s5022_s12 + $0x18] sm:$0xff]  }
 0x23a   : > { %v1413_v36 = vpop.f32.mrf.mxu0  ;;  %2122 = vmatmul.mubr.bf16.vlgmr.msra.gmra.mxu0 %v1480_v33 }
 0x23b   : > { %3328 = vmatpush3.bf16.msra.mxu0 %v4638_v19 }
 0x23c   : > { %v1415_v21 = vpop.f32.mrf.mxu0  ;;  %3329 = vmatprep.subr.bf16.mxu0 %v4643_v20 }
 0x23d   : > { %v1482_v38 = vpack.c.bf16 %v1415_v21, %v1411_v34  ;;  %v4691_v34 = vld [vmem:[%s5022_s12 + $0x50] sm:$0xff]  }
 0x23e   : > { %v1417_v37 = vpop.f32.mrf.mxu0 }
 0x23f   : > { %v1483_v22 = vpack.c.bf16 %v1417_v37, %v1413_v36  ;;  %3330 = vmatpush3.bf16.msra.mxu0 %v4649_v23  ;;  %v4697_v36 = vld [vmem:[%s5022_s12 + $0x10] sm:$0xff]  }
 0x240   : > { %v1421_v39 = vpop.f32.mrf.mxu0  ;;  %3331 = vmatprep.subr.bf16.mxu0 %v4655_v25 }
 0x241   : > { %2131 = vmatprep.mubr.bf16.mxu0 %v1483_v22 }
 0x242   : > { %v1423_v40 = vpop.f32.mrf.mxu0  ;;  %2132 = vmatmul.mubr.bf16.gmra.mxu0 %v1482_v38 }
 0x243   : > { %3332 = vmatpush3.bf16.msra.mxu0 %v4661_v26 }
 0x244   : > { %v1425_v41 = vpop.f32.mrf.mxu0  ;;  %3333 = vmatprep.subr.bf16.mxu0 %v4667_v28 }
 0x245   : > { %v1484_v35 = vpack.c.bf16 %v1425_v41, %v1421_v39 }
 0x246   : > { %v1427_v42 = vpop.f32.mrf.mxu0 }
 0x247   : > { %v1485_v43 = vpack.c.bf16 %v1427_v42, %v1423_v40  ;;  %3334 = vmatpush3.bf16.msra.mxu0 %v4673_v29 }
 0x248   : > { %v1431_v44 = vpop.f32.mrf.mxu0  ;;  %3335 = vmatprep.subr.bf16.mxu0 %v4679_v31 }
 0x249   : > { %2141 = vmatprep.mubr.bf16.mxu0 %v1485_v43  ;;  %v2204_v43 = vlaneseq }
 0x24a   : > { %v1433_v45 = vpop.f32.mrf.mxu0  ;;  %2142 = vmatmul.mubr.bf16.gmra.mxu0 %v1484_v35 }
 0x24b   : > { %3336 = vmatpush3.bf16.msra.mxu0 %v4685_v32 }
 0x24c   : > { %v1435_v46 = vpop.f32.mrf.mxu0  ;;  %3337 = vmatprep.subr.bf16.mxu0 %v4691_v34 }
 0x24d   : > { %v1486_v49 = vpack.c.bf16 %v1435_v46, %v1431_v44  ;;  %v4707_v44 = vshrl.u32 %v2204_v43, 7 }
 0x24e   : > { %v1437_v47 = vpop.f32.mrf.mxu0 }
 0x24f   : > { %v1487_v48 = vpack.c.bf16 %v1437_v47, %v1433_v45  ;;  %3338 = vmatpush3.bf16.msra.mxu0 %v4697_v36  ;;  %v2210_v47 = vsub.s32 1, %v4707_v44 }
 0x250   : > { %v1441_v50 = vpop.f32.mrf.mxu0 }
 0x251   : > { %2151 = vmatprep.mubr.bf16.mxu0 %v1487_v48  ;;  %v2206_v48 = vsub.s32 0, %v4707_v44 }
 0x252   : > { %v1443_v51 = vpop.f32.mrf.mxu0  ;;  %2152 = vmatmul.mubr.bf16.gmra.mxu0 %v1486_v49 }
 0x254   : > { %v1445_v52 = vpop.f32.mrf.mxu0 }
 0x255   : > { %v1488_v55 = vpack.c.bf16 %v1445_v52, %v1441_v50 }
 0x256   : > { %v1447_v53 = vpop.f32.mrf.mxu0 }
 0x257   : > { %v1489_v54 = vpack.c.bf16 %v1447_v53, %v1443_v51  ;;  %v2202_v51 = vld [vmem:[%s5023_s7] sm:$0x3]  ;;  %s3314_s7 = sshll.u32 %s2898_s10, 7 }
 0x258   : > { %v1451_v56 = vpop.f32.mrf.mxu0  ;;  %s4879_s22 = scalar_lea.hbm %s5028_s18, %s3314_s7 }
 0x259   : > { %2161 = vmatprep.mubr.bf16.mxu0 %v1489_v54  ;;  %v4720_v54 = vrot.slane %v2202_v51, %v2210_v47 }
 0x25a   : > { %v1453_v57 = vpop.f32.mrf.mxu0  ;;  %2162 = vmatmul.mubr.bf16.gmra.mxu0 %v1488_v55 }
 0x25c   : > { %v1455_v58 = vpop.f32.mrf.mxu0 }
 0x25d   : > { %v1490_v61 = vpack.c.bf16 %v1455_v58, %v1451_v56 }
 0x25e   : > { %v1457_v59 = vpop.f32.mrf.mxu0 }
 0x25f   : > { %v1491_v60 = vpack.c.bf16 %v1457_v59, %v1453_v57  ;;  %v4724_v57 = vrot.slane %v2202_v51, %v2206_v48 }
 0x260   : > { %v1461_v62 = vpop.f32.mrf.mxu0 }
 0x261   : > { %2171 = vmatprep.mubr.bf16.mxu0 %v1491_v60 }
 0x262   : > { %v1463_v63 = vpop.f32.mrf.mxu0  ;;  %2172 = vmatmul.mubr.bf16.gmra.mxu0 %v1490_v61 }
 0x264   : > { %v1465_v0 = vpop.f32.mrf.mxu0 }
 0x265   : > { %v1492_v3 = vpack.c.bf16 %v1465_v0, %v1461_v62  ;;  %v1850_v16 = vpop.f32.mrf.mxu1 }
 0x266   : > { %v1467_v1 = vpop.f32.mrf.mxu0 }
 0x267   : > { %v1493_v2 = vpack.c.bf16 %v1467_v1, %v1463_v63  ;;  %v1852_v17 = vpop.f32.mrf.mxu1 }
 0x268   : > { %v1471_v4 = vpop.f32.mrf.mxu0 }
 0x269   : > { %2181 = vmatprep.mubr.bf16.mxu0 %v1493_v2  ;;  %v1854_v24 = vpop.f32.mrf.mxu1 }
 0x26a   : > { %v1473_v5 = vpop.f32.mrf.mxu0  ;;  %2182 = vmatmul.mubr.bf16.gmra.mxu0 %v1492_v3 }
 0x26b   : > { %v1856_v27 = vpop.f32.mrf.mxu1 }
 0x26c   : > { %v1475_v6 = vpop.f32.mrf.mxu0 }
 0x26d   : > { %v1494_v9 = vpack.c.bf16 %v1475_v6, %v1471_v4  ;;  %v1860_v30 = vpop.f32.mrf.mxu1 }
 0x26e   : > { %v1477_v7 = vpop.f32.mrf.mxu0 }
 0x26f   : > { %v1495_v8 = vpack.c.bf16 %v1477_v7, %v1473_v5  ;;  %v1862_v33 = vpop.f32.mrf.mxu1 }
 0x271   : > { %2191 = vmatprep.mubr.bf16.mxu0 %v1495_v8  ;;  %v1864_v21 = vpop.f32.mrf.mxu1 }
 0x272   : > { %2192 = vmatmul.mubr.bf16.gmra.mxu0 %v1494_v9 }
 0x273   : > { %v1866_v37 = vpop.f32.mrf.mxu1 }
 0x275   : > { %v1870_v22 = vpop.f32.mrf.mxu1 }
 0x277   : > { %v1872_v38 = vpop.f32.mrf.mxu1 }
 0x279   : > { %v1874_v39 = vpop.f32.mrf.mxu1 }
 0x27b   : > { %v1876_v40 = vpop.f32.mrf.mxu1 }
 0x27d   : > { %v4701_v41 = vpop.f32.mrf.mxu1 }
 0x27f   : > { %v4703_v42 = vpop.f32.mrf.mxu1 }
 0x281   : > { %v4705_v35 = vpop.f32.mrf.mxu1 }
 0x283   : > { %v4709_v45 = vpop.f32.mrf.mxu1 }
 0x285   : > { %v4713_v50 = vpop.f32.mrf.mxu1 }
 0x287   : > { %v4726_v59 = vpop.f32.mrf.mxu1 }
 0x289   : > { %v4732_v3 = vpop.f32.mrf.mxu1 }
 0x28b   : > { %v4734_v11 = vpop.f32.mrf.mxu1 }
 0x2fa   : > { %v2123_v46 = vpop.f32.mrf.mxu0 }
 0x2fb   : > { %v2124_v56 = vadd.f32 %v2123_v46, %v1850_v16 }
 0x2fc   : > { %v2125_v49 = vpop.f32.mrf.mxu0 }
 0x2fd   : > { %v2126_v53 = vadd.f32 %v2125_v49, %v1852_v17  ;;  %v2214_v1 = vadd.f32 %v4724_v57, %v2124_v56 }
 0x2fe   : > { %v2127_v52 = vpop.f32.mrf.mxu0 }
 0x2ff   : > { %v2128_v55 = vadd.f32 %v2127_v52, %v1854_v24  ;;  %v2215_v63 = vadd.f32 %v4720_v54, %v2126_v53  ;;  %v4742_v24 = vpop.f32.mrf.mxu1 }
 0x300   : > { %v2129_v58 = vpop.f32.mrf.mxu0 }
 0x301   : > { %v2130_v60 = vadd.f32 %v2129_v58, %v1856_v27  ;;  %v2216_v61 = vadd.f32 %v4724_v57, %v2128_v55  ;;  %v1902_v43 = vpop.f32.mrf.mxu1 }
 0x302   : > { %v2133_v62 = vpop.f32.mrf.mxu0 }
 0x303   : > { %v2217_v0 = vadd.f32 %v4720_v54, %v2130_v60  ;;  %v2246_v5 = vpack.c.bf16 %v2216_v61, %v2214_v1  ;;  %v2134_v9 = vadd.f32 %v2133_v62, %v1860_v30 }
 0x304   : > { %v2135_v2 = vpop.f32.mrf.mxu0 }
 0x305   : > { %v2247_v4 = vpack.c.bf16 %v2217_v0, %v2215_v63  ;;  %v2136_v7 = vadd.f32 %v2135_v2, %v1862_v33  ;;  %v2218_v17 = vadd.f32 %v4724_v57, %v2134_v9 }
 0x306   : > { %v2137_v6 = vpop.f32.mrf.mxu0 }
 0x307   : > { %v2138_v8 = vadd.f32 %v2137_v6, %v1864_v21  ;;  %2498 = vmatprep.mubr.bf16.mxu1 %v2247_v4  ;;  %v2219_v15 = vadd.f32 %v4720_v54, %v2136_v7 }
 0x308   : > { %v2139_v10 = vpop.f32.mrf.mxu0  ;;  %2499 = vmatmul.mubr.bf16.vlgmr.msra.gmra.mxu1 %v2246_v5 }
 0x309   : > { %v2140_v12 = vadd.f32 %v2139_v10, %v1866_v37  ;;  %3399 = vmatpush3.bf16.msra.mxu1 %v4638_v19  ;;  %v2220_v13 = vadd.f32 %v4724_v57, %v2138_v8 }
 0x30a   : > { %v2143_v14 = vpop.f32.mrf.mxu0  ;;  %3392 = vmatprep.subr.bf16.mxu1 %v4643_v20 }
 0x30b   : > { %v2221_v16 = vadd.f32 %v4720_v54, %v2140_v12  ;;  %v2248_v33 = vpack.c.bf16 %v2220_v13, %v2218_v17  ;;  %v2144_v20 = vadd.f32 %v2143_v14, %v1870_v22 }
 0x30c   : > { %v2145_v18 = vpop.f32.mrf.mxu0 }
 0x30d   : > { %v2249_v27 = vpack.c.bf16 %v2221_v16, %v2219_v15  ;;  %3400 = vmatpush3.bf16.msra.mxu1 %v4649_v23  ;;  %v2146_v19 = vadd.f32 %v2145_v18, %v1872_v38 }
 0x30e   : > { %v2147_v30 = vpop.f32.mrf.mxu0  ;;  %3393 = vmatprep.subr.bf16.mxu1 %v4655_v25  ;;  %v2222_v25 = vadd.f32 %v4724_v57, %v2144_v20 }
 0x30f   : > { %v2148_v21 = vadd.f32 %v2147_v30, %v1874_v39  ;;  %2508 = vmatprep.mubr.bf16.mxu1 %v2249_v27  ;;  %v2223_v23 = vadd.f32 %v4720_v54, %v2146_v19  ;;  %v1904_v39 = vpop.f32.mrf.mxu1 }
 0x310   : > { %v2149_v37 = vpop.f32.mrf.mxu0  ;;  %2509 = vmatmul.mubr.bf16.gmra.mxu1 %v2248_v33 }
 0x311   : > { %v2150_v46 = vadd.f32 %v2149_v37, %v1876_v40  ;;  %3401 = vmatpush3.bf16.msra.mxu1 %v4661_v26  ;;  %v2224_v49 = vadd.f32 %v4724_v57, %v2148_v21  ;;  %v1906_v58 = vpop.f32.mrf.mxu1 }
 0x312   : > { %v2153_v51 = vpop.f32.mrf.mxu0  ;;  %3394 = vmatprep.subr.bf16.mxu1 %v4667_v28 }
 0x313   : > { %v2225_v52 = vadd.f32 %v4720_v54, %v2150_v46  ;;  %v2250_v40 = vpack.c.bf16 %v2224_v49, %v2222_v25  ;;  %v2154_v28 = vadd.f32 %v2153_v51, %v4701_v41  ;;  %v1910_v41 = vpop.f32.mrf.mxu1 }
 0x314   : > { %v2155_v38 = vpop.f32.mrf.mxu0 }
 0x315   : > { %v2251_v22 = vpack.c.bf16 %v2225_v52, %v2223_v23  ;;  %3402 = vmatpush3.bf16.msra.mxu1 %v4673_v29  ;;  %v2156_v26 = vadd.f32 %v2155_v38, %v4703_v42  ;;  %v1912_v4 = vpop.f32.mrf.mxu1 }
 0x316   : > { %v2157_v53 = vpop.f32.mrf.mxu0  ;;  %3395 = vmatprep.subr.bf16.mxu1 %v4679_v31 }
 0x317   : > { %v2158_v55 = vadd.f32 %v2157_v53, %v4705_v35  ;;  %2518 = vmatprep.mubr.bf16.mxu1 %v2251_v22  ;;  %v2227_v31 = vadd.f32 %v4720_v54, %v2156_v26  ;;  %v2226_v35 = vadd.f32 %v4724_v57, %v2154_v28  ;;  %v1914_v10 = vpop.f32.mrf.mxu1 }
 0x318   : > { %v2159_v56 = vpop.f32.mrf.mxu0  ;;  %2519 = vmatmul.mubr.bf16.gmra.mxu1 %v2250_v40 }
 0x319   : > { %v2160_v60 = vadd.f32 %v2159_v56, %v4709_v45  ;;  %3403 = vmatpush3.bf16.msra.mxu1 %v4685_v32  ;;  %v2228_v29 = vadd.f32 %v4724_v57, %v2158_v55  ;;  %v1916_v16 = vpop.f32.mrf.mxu1 }
 0x31a   : > { %v2163_v61 = vpop.f32.mrf.mxu0  ;;  %3396 = vmatprep.subr.bf16.mxu1 %v4691_v34 }
 0x31b   : > { %v2229_v42 = vadd.f32 %v4720_v54, %v2160_v60  ;;  %v2252_v45 = vpack.c.bf16 %v2228_v29, %v2226_v35  ;;  %v2164_v34 = vadd.f32 %v2163_v61, %v4713_v50  ;;  %v1920_v21 = vpop.f32.mrf.mxu1 }
 0x31c   : > { %v2165_v62 = vpop.f32.mrf.mxu0 }
 0x31d   : > { %v2253_v63 = vpack.c.bf16 %v2229_v42, %v2227_v31  ;;  %3404 = vmatpush3.bf16.msra.mxu1 %v4697_v36  ;;  %v2166_v32 = vadd.f32 %v2165_v62, %v4726_v59  ;;  %v2230_v9 = vadd.f32 %v4724_v57, %v2164_v34  ;;  %v1922_v23 = vpop.f32.mrf.mxu1  ;;  %v3802_v34 = vld [vmem:[%s5022_s12 + $0x8] sm:$0xff]  }
 0x31e   : > { %v2167_v0 = vpop.f32.mrf.mxu0 }
 0x31f   : > { %v2168_v1 = vadd.f32 %v2167_v0, %v4732_v3  ;;  %2528 = vmatprep.mubr.bf16.mxu1 %v2253_v63  ;;  %v2231_v8 = vadd.f32 %v4720_v54, %v2166_v32  ;;  %v1924_v26 = vpop.f32.mrf.mxu1 }
 0x320   : > { %v2169_v2 = vpop.f32.mrf.mxu0  ;;  %2529 = vmatmul.mubr.bf16.gmra.mxu1 %v2252_v45 }
 0x321   : > { %v2170_v5 = vadd.f32 %v2169_v2, %v4734_v11  ;;  %v2232_v6 = vadd.f32 %v4724_v57, %v2168_v1  ;;  %v1926_v61 = vpop.f32.mrf.mxu1  ;;  %v3801_v1 = vld [vmem:[%s5022_s12 + $0x48] sm:$0xff]   ;;  %v2294_v2 = vld [vmem:[%s5024_s29] sm:$0x3] }
 0x322   : > { %v2173_v7 = vpop.f32.mrf.mxu0  ;;  %3339 = vmatprep.subr.bf16.mxu0 %v3801_v1  ;;  %3397 = vmatprep.subr.bf16.mxu1 %v3801_v1 }
 0x323   : > { %v2233_v36 = vadd.f32 %v4720_v54, %v2170_v5  ;;  %v2254_v13 = vpack.c.bf16 %v2232_v6, %v2230_v9  ;;  %v2174_v15 = vadd.f32 %v2173_v7, %v4742_v24  ;;  %3340 = vmatpush3.bf16.msra.mxu0 %v3802_v34  ;;  %3405 = vmatpush3.bf16.msra.mxu1 %v3802_v34 }
 0x324   : > { %v2175_v59 = vpop.f32.mrf.mxu0  ;;  %v4807_v5 = vrot.slane %v2294_v2, %v2210_v47 }
 0x325   : > { %v2255_v3 = vpack.c.bf16 %v2233_v36, %v2231_v8  ;;  %v2176_v50 = vadd.f32 %v2175_v59, %v1902_v43  ;;  %v2234_v19 = vadd.f32 %v4724_v57, %v2174_v15 }
 0x326   : > { %v2177_v12 = vpop.f32.mrf.mxu0 }
 0x327   : > { %v2178_v14 = vadd.f32 %v2177_v12, %v1904_v39  ;;  %2538 = vmatprep.mubr.bf16.mxu1 %v2255_v3  ;;  %v2235_v30 = vadd.f32 %v4720_v54, %v2176_v50 }
 0x328   : > { %v2179_v11 = vpop.f32.mrf.mxu0  ;;  %2539 = vmatmul.mubr.bf16.gmra.mxu1 %v2254_v13 }
 0x329   : > { %v2180_v17 = vadd.f32 %v2179_v11, %v1906_v58  ;;  %v2236_v18 = vadd.f32 %v4724_v57, %v2178_v14 }
 0x32a   : > { %v2183_v27 = vpop.f32.mrf.mxu0 }
 0x32b   : > { %v2237_v33 = vadd.f32 %v4720_v54, %v2180_v17  ;;  %v2256_v46 = vpack.c.bf16 %v2236_v18, %v2234_v19  ;;  %v2184_v51 = vadd.f32 %v2183_v27, %v1910_v41 }
 0x32c   : > { %v2185_v20 = vpop.f32.mrf.mxu0 }
 0x32d   : > { %v2257_v37 = vpack.c.bf16 %v2237_v33, %v2235_v30  ;;  %v2186_v49 = vadd.f32 %v2185_v20, %v1912_v4  ;;  %v2238_v40 = vadd.f32 %v4724_v57, %v2184_v51  ;;  %v4803_v4 = vrot.slane %v2294_v2, %v2206_v48 }
 0x32e   : > { %v2187_v43 = vpop.f32.mrf.mxu0 }
 0x32f   : > { %v2188_v24 = vadd.f32 %v2187_v43, %v1914_v10  ;;  %2548 = vmatprep.mubr.bf16.mxu1 %v2257_v37  ;;  %v2239_v22 = vadd.f32 %v4720_v54, %v2186_v49 }
 0x330   : > { %v2189_v52 = vpop.f32.mrf.mxu0  ;;  %2549 = vmatmul.mubr.bf16.gmra.mxu1 %v2256_v46 }
 0x331   : > { %v2190_v25 = vadd.f32 %v2189_v52, %v1916_v16  ;;  %v2240_v38 = vadd.f32 %v4724_v57, %v2188_v24 }
 0x332   : > { %v2193_v39 = vpop.f32.mrf.mxu0 }
 0x333   : > { %v2241_v53 = vadd.f32 %v4720_v54, %v2190_v25  ;;  %v2258_v58 = vpack.c.bf16 %v2240_v38, %v2238_v40  ;;  %v2194_v31 = vadd.f32 %v2193_v39, %v1920_v21 }
 0x334   : > { %v2195_v55 = vpop.f32.mrf.mxu0 }
 0x335   : > { %v2259_v28 = vpack.c.bf16 %v2241_v53, %v2239_v22  ;;  %v2196_v60 = vadd.f32 %v2195_v55, %v1922_v23  ;;  %v2242_v0 = vadd.f32 %v4724_v57, %v2194_v31 }
 0x336   : > { %v2197_v56 = vpop.f32.mrf.mxu0 }
 0x337   : > { %v2198_v29 = vadd.f32 %v2197_v56, %v1924_v26  ;;  %2558 = vmatprep.mubr.bf16.mxu1 %v2259_v28  ;;  %v2243_v41 = vadd.f32 %v4720_v54, %v2196_v60 }
 0x338   : > { %v2199_v42 = vpop.f32.mrf.mxu0  ;;  %2559 = vmatmul.mubr.bf16.gmra.mxu1 %v2258_v58 }
 0x339   : > { %v2200_v35 = vadd.f32 %v2199_v42, %v1926_v61  ;;  %v2244_v62 = vadd.f32 %v4724_v57, %v2198_v29  ;;  %v3804_v57 = vld [vmem:[%s5022_s12] sm:$0xff]  }
 0x33b   : > { %v2245_v63 = vadd.f32 %v4720_v54, %v2200_v35  ;;  %v2260_v32 = vpack.c.bf16 %v2244_v62, %v2242_v0  ;;  %v3803_v54 = vld [vmem:[%s5022_s12 + $0x40] sm:$0xff]  }
 0x33c   : > { %3341 = vmatprep.subr.bf16.mxu0 %v3803_v54  ;;  %3398 = vmatprep.subr.bf16.mxu1 %v3803_v54 }
 0x33d   : > { %v2261_v45 = vpack.c.bf16 %v2245_v63, %v2243_v41  ;;  %3342 = vmatpush3.bf16.msra.mxu0 %v3804_v57  ;;  %3406 = vmatpush3.bf16.msra.mxu1 %v3804_v57 }
 0x33f   : > { %2568 = vmatprep.mubr.bf16.mxu1 %v2261_v45 }
 0x340   : > { %2569 = vmatmul.mubr.bf16.gmra.mxu1 %v2260_v32 }
 0x3c8   : > { %v2500_v6 = vpop.f32.mrf.mxu1 }
 0x3c9   : > { %v2501_v7 = vadd.f32 %v2500_v6, %v4803_v4 }
 0x3ca   : > { %v2502_v8 = vpop.f32.mrf.mxu1 }
 0x3cb   : > { %2579 = vst [vmem:[%s4070_s14] sm:$0xff] %v2501_v7  ;;  %v2503_v36 = vadd.f32 %v2502_v8, %v4807_v5 }
 0x3cc   : > { %v2504_v9 = vpop.f32.mrf.mxu1 }
 0x3cd   : > { %2580 = vst [vmem:[%s4070_s14 + $0x8] sm:$0xff] %v2503_v36  ;;  %v2505_v59 = vadd.f32 %v2504_v9, %v4803_v4 }
 0x3ce   : > { %v2506_v10 = vpop.f32.mrf.mxu1 }
 0x3cf   : > { %2581 = vst [vmem:[%s4070_s14 + $0x10] sm:$0xff] %v2505_v59  ;;  %v2507_v44 = vadd.f32 %v2506_v10, %v4807_v5  ;;  %v2611_v12 = vpack.c.bf16 %v2505_v59, %v2501_v7 }
 0x3d0   : > { %v2510_v47 = vpop.f32.mrf.mxu1 }
 0x3d1   : > { %2582 = vst [vmem:[%s4070_s14 + $0x18] sm:$0xff] %v2507_v44  ;;  %v2612_v48 = vpack.c.bf16 %v2507_v44, %v2503_v36  ;;  %v2511_v3 = vadd.f32 %v2510_v47, %v4803_v4 }
 0x3d2   : > { %v2512_v13 = vpop.f32.mrf.mxu1 }
 0x3d3   : > { %2583 = vst [vmem:[%s4070_s14 + $0x20] sm:$0xff] %v2511_v3  ;;  %v2513_v50 = vadd.f32 %v2512_v13, %v4807_v5  ;;  %2794 = vmatprep.mubr.bf16.mxu0 %v2612_v48 }
 0x3d4   : > { %v2514_v14 = vpop.f32.mrf.mxu1  ;;  %2795 = vmatmul.mubr.bf16.vlgmr.msra.gmra.mxu0 %v2611_v12 }
 0x3d5   : > { %2584 = vst [vmem:[%s4070_s14 + $0x28] sm:$0xff] %v2513_v50  ;;  %v2515_v15 = vadd.f32 %v2514_v14, %v4803_v4 }
 0x3d6   : > { %v2516_v11 = vpop.f32.mrf.mxu1 }
 0x3d7   : > { %2585 = vst [vmem:[%s4070_s14 + $0x30] sm:$0xff] %v2515_v15  ;;  %v2517_v16 = vadd.f32 %v2516_v11, %v4807_v5  ;;  %v2613_v30 = vpack.c.bf16 %v2515_v15, %v2511_v3 }
 0x3d8   : > { %v2520_v17 = vpop.f32.mrf.mxu1 }
 0x3d9   : > { %2586 = vst [vmem:[%s4070_s14 + $0x38] sm:$0xff] %v2517_v16  ;;  %v2614_v18 = vpack.c.bf16 %v2517_v16, %v2513_v50  ;;  %v2521_v27 = vadd.f32 %v2520_v17, %v4803_v4 }
 0x3da   : > { %v2522_v33 = vpop.f32.mrf.mxu1 }
 0x3db   : > { %2587 = vst [vmem:[%s4070_s14 + $0x40] sm:$0xff] %v2521_v27  ;;  %v2523_v19 = vadd.f32 %v2522_v33, %v4807_v5  ;;  %2802 = vmatprep.mubr.bf16.mxu0 %v2614_v18 }
 0x3dc   : > { %v2524_v21 = vpop.f32.mrf.mxu1  ;;  %2803 = vmatmul.mubr.bf16.gmra.mxu0 %v2613_v30 }
 0x3dd   : > { %2588 = vst [vmem:[%s4070_s14 + $0x48] sm:$0xff] %v2523_v19  ;;  %v2525_v20 = vadd.f32 %v2524_v21, %v4803_v4 }
 0x3de   : > { %v2526_v37 = vpop.f32.mrf.mxu1 }
 0x3df   : > { %2589 = vst [vmem:[%s4070_s14 + $0x50] sm:$0xff] %v2525_v20  ;;  %v2527_v43 = vadd.f32 %v2526_v37, %v4807_v5  ;;  %v2615_v51 = vpack.c.bf16 %v2525_v20, %v2521_v27 }
 0x3e0   : > { %v2530_v46 = vpop.f32.mrf.mxu1 }
 0x3e1   : > { %2590 = vst [vmem:[%s4070_s14 + $0x58] sm:$0xff] %v2527_v43  ;;  %v2616_v49 = vpack.c.bf16 %v2527_v43, %v2523_v19  ;;  %v2531_v24 = vadd.f32 %v2530_v46, %v4803_v4 }
 0x3e2   : > { %v2532_v23 = vpop.f32.mrf.mxu1 }
 0x3e3   : > { %2591 = vst [vmem:[%s4070_s14 + $0x60] sm:$0xff] %v2531_v24  ;;  %v2533_v52 = vadd.f32 %v2532_v23, %v4807_v5  ;;  %2810 = vmatprep.mubr.bf16.mxu0 %v2616_v49 }
 0x3e4   : > { %v2534_v25 = vpop.f32.mrf.mxu1  ;;  %2811 = vmatmul.mubr.bf16.gmra.mxu0 %v2615_v51 }
 0x3e5   : > { %2592 = vst [vmem:[%s4070_s14 + $0x68] sm:$0xff] %v2533_v52  ;;  %v2535_v38 = vadd.f32 %v2534_v25, %v4803_v4 }
 0x3e6   : > { %v2536_v39 = vpop.f32.mrf.mxu1 }
 0x3e7   : > { %2593 = vst [vmem:[%s4070_s14 + $0x70] sm:$0xff] %v2535_v38  ;;  %v2537_v22 = vadd.f32 %v2536_v39, %v4807_v5  ;;  %v2617_v55 = vpack.c.bf16 %v2535_v38, %v2531_v24 }
 0x3e8   : > { %v2540_v53 = vpop.f32.mrf.mxu1 }
 0x3e9   : > { %2594 = vst [vmem:[%s4070_s14 + $0x78] sm:$0xff] %v2537_v22  ;;  %v2618_v40 = vpack.c.bf16 %v2537_v22, %v2533_v52  ;;  %v2541_v26 = vadd.f32 %v2540_v53, %v4803_v4 }
 0x3ea   : > { %v2542_v28 = vpop.f32.mrf.mxu1 }
 0x3eb   : > { %2595 = vst [vmem:[%s4070_s14 + $0x80] sm:$0xff] %v2541_v26  ;;  %v2543_v56 = vadd.f32 %v2542_v28, %v4807_v5  ;;  %2818 = vmatprep.mubr.bf16.mxu0 %v2618_v40 }
 0x3ec   : > { %v2544_v58 = vpop.f32.mrf.mxu1  ;;  %2819 = vmatmul.mubr.bf16.gmra.mxu0 %v2617_v55 }
 0x3ed   : > { %2596 = vst [vmem:[%s4070_s14 + $0x88] sm:$0xff] %v2543_v56  ;;  %v2545_v60 = vadd.f32 %v2544_v58, %v4803_v4 }
 0x3ee   : > { %v2546_v29 = vpop.f32.mrf.mxu1 }
 0x3ef   : > { %2597 = vst [vmem:[%s4070_s14 + $0x90] sm:$0xff] %v2545_v60  ;;  %v2547_v61 = vadd.f32 %v2546_v29, %v4807_v5  ;;  %v2619_v62 = vpack.c.bf16 %v2545_v60, %v2541_v26 }
 0x3f0   : > { %v2550_v31 = vpop.f32.mrf.mxu1 }
 0x3f1   : > { %2598 = vst [vmem:[%s4070_s14 + $0x98] sm:$0xff] %v2547_v61  ;;  %v2620_v42 = vpack.c.bf16 %v2547_v61, %v2543_v56  ;;  %v2551_v35 = vadd.f32 %v2550_v31, %v4803_v4 }
 0x3f2   : > { %v2552_v41 = vpop.f32.mrf.mxu1 }
 0x3f3   : > { %2599 = vst [vmem:[%s4070_s14 + $0xa0] sm:$0xff] %v2551_v35  ;;  %v2553_v63 = vadd.f32 %v2552_v41, %v4807_v5  ;;  %2826 = vmatprep.mubr.bf16.mxu0 %v2620_v42 }
 0x3f4   : > { %v2554_v0 = vpop.f32.mrf.mxu1  ;;  %2827 = vmatmul.mubr.bf16.gmra.mxu0 %v2619_v62 }
 0x3f5   : > { %2600 = vst [vmem:[%s4070_s14 + $0xa8] sm:$0xff] %v2553_v63  ;;  %v2555_v45 = vadd.f32 %v2554_v0, %v4803_v4 }
 0x3f6   : > { %v2556_v32 = vpop.f32.mrf.mxu1 }
 0x3f7   : > { %2601 = vst [vmem:[%s4070_s14 + $0xb0] sm:$0xff] %v2555_v45  ;;  %v2557_v1 = vadd.f32 %v2556_v32, %v4807_v5  ;;  %v2621_v2 = vpack.c.bf16 %v2555_v45, %v2551_v35 }
 0x3f8   : > { %v2560_v34 = vpop.f32.mrf.mxu1 }
 0x3f9   : > { %2602 = vst [vmem:[%s4070_s14 + $0xb8] sm:$0xff] %v2557_v1  ;;  %v2622_v54 = vpack.c.bf16 %v2557_v1, %v2553_v63  ;;  %v2561_v57 = vadd.f32 %v2560_v34, %v4803_v4 }
 0x3fa   : > { %v2562_v6 = vpop.f32.mrf.mxu1 }
 0x3fb   : > { %2603 = vst [vmem:[%s4070_s14 + $0xc0] sm:$0xff] %v2561_v57  ;;  %v2563_v7 = vadd.f32 %v2562_v6, %v4807_v5  ;;  %2834 = vmatprep.mubr.bf16.mxu0 %v2622_v54 }
 0x3fc   : > { %v2564_v8 = vpop.f32.mrf.mxu1  ;;  %2835 = vmatmul.mubr.bf16.gmra.mxu0 %v2621_v2 }
 0x3fd   : > { %2604 = vst [vmem:[%s4070_s14 + $0xc8] sm:$0xff] %v2563_v7  ;;  %v2565_v36 = vadd.f32 %v2564_v8, %v4803_v4 }
 0x3fe   : > { %v2566_v9 = vpop.f32.mrf.mxu1 }
 0x3ff   : > { %2605 = vst [vmem:[%s4070_s14 + $0xd0] sm:$0xff] %v2565_v36  ;;  %v2567_v59 = vadd.f32 %v2566_v9, %v4807_v5  ;;  %v2623_v48 = vpack.c.bf16 %v2565_v36, %v2561_v57 }
 0x400   : > { %v2570_v10 = vpop.f32.mrf.mxu1 }
 0x401   : > { %2606 = vst [vmem:[%s4070_s14 + $0xd8] sm:$0xff] %v2567_v59  ;;  %v2624_v44 = vpack.c.bf16 %v2567_v59, %v2563_v7  ;;  %v2571_v47 = vadd.f32 %v2570_v10, %v4803_v4 }
 0x402   : > { %v2572_v3 = vpop.f32.mrf.mxu1 }
 0x403   : > { %2607 = vst [vmem:[%s4070_s14 + $0xe0] sm:$0xff] %v2571_v47  ;;  %v2573_v12 = vadd.f32 %v2572_v3, %v4807_v5  ;;  %2842 = vmatprep.mubr.bf16.mxu0 %v2624_v44 }
 0x404   : > { %v2574_v13 = vpop.f32.mrf.mxu1  ;;  %2843 = vmatmul.mubr.bf16.gmra.mxu0 %v2623_v48 }
 0x405   : > { %2608 = vst [vmem:[%s4070_s14 + $0xe8] sm:$0xff] %v2573_v12  ;;  %v2575_v50 = vadd.f32 %v2574_v13, %v4803_v4 }
 0x406   : > { %v2576_v14 = vpop.f32.mrf.mxu1 }
 0x407   : > { %2609 = vst [vmem:[%s4070_s14 + $0xf0] sm:$0xff] %v2575_v50  ;;  %v2577_v15 = vadd.f32 %v2576_v14, %v4807_v5  ;;  %v2625_v16 = vpack.c.bf16 %v2575_v50, %v2571_v47 }
 0x409   : > { %2610 = vst [vmem:[%s4070_s14 + $0xf8] sm:$0xff] %v2577_v15  ;;  %v2626_v11 = vpack.c.bf16 %v2577_v15, %v2573_v12  ;;  %s3809_s14 = sshll.u32 %s3900_s28, 4  ;;  %s3810_s14 = int_to_ptr.vmem [resolvable:$false] %s3809_s14 }
 0x40a   : > { %s3811_s19 = scalar_lea.vmem %s3810_s14, 8192  ;;  %p3812_p5 = scmp.lt.s32.totalorder %s4881_s25, %s3810_s14 }
 0x40b   : > { %2850 = vmatprep.mubr.bf16.mxu1 %v2626_v11  ;;  %p3813_p6 = scmp.lt.s32.totalorder %s3811_s19, %s3805_s23 }
 0x40c   : > { %2851 = vmatmul.mubr.bf16.vlgmr.msra.gmra.mxu1 %v2625_v16 }
 0x40d   : > { %p3814_p7 = por %p3813_p6, %p3812_p5 }
 0x40f   : > { %p3815_p9 = pnand %p3814_p7, %p3808_p4 }
 0x411   : > { %3818 = shalt.err (!%p3815_p9)
}
 0x412   : > { %s3819_s11 = scalar_lea.hbm %s4879_s22, 4096  ;;  %s3823_s21 = scalar_lea.hbm %s5028_s18, 16384 }
 0x413   : > { %p3820_p10 = scmp.ne.s32.totalorder %s4879_s22, %s3819_s11  ;;  %p3824_p13 = scmp.lt.s32.totalorder %s4879_s22, %s5028_s18 }
 0x414   : > { %p3825_p0 = scmp.lt.s32.totalorder %s3823_s21, %s3819_s11 }
 0x415   : > { %p3821_p11 = pnand %p3820_p10, %p4024_p3 }
 0x416   : > { %p3826_p1 = por %p3825_p0, %p3824_p13 }
 0x417   : > { %p3822_p12 = pneg %p3821_p11 }
 0x419   : > { %p3827_p2 = pnand %p3826_p1, %p3822_p12 }
 0x41b   : > { %3830 = shalt.err (!%p3827_p2)
}
 0x41c   : > { %s3901_s10 = smov 256   ;;  %s3902_s7 = smov 16  }
 0x41d   : > { %3407 = dma.vmem_to_hbm [thread:$0]  (%p4024_p3), %s4881_s25, 4096, %s4879_s22, %s4885_s20, %s3901_s10, %s3901_s10, %s3902_s7  }
 0x41e   : > { %s5030_s17 = sld [smem:[#allocation21_spill]] }
 0x424   : > { %v4911_v5 = vld [vmem:[%s5030_s17] ss:$0 sm:$0xff] }
 0x494   : > { %v3343_v4 = vpop.f32.mrf.mxu0 }
 0x496   : > { %v3344_v17 = vpop.f32.mrf.mxu0 }
 0x497   : > { %v3345_v18 = vadd.f32 %v3344_v17, %v3343_v4 }
 0x498   : > { %v3346_v27 = vpop.f32.mrf.mxu0 }
 0x499   : > { %v2797_v30 = vadd.f32 %v3345_v18, %v4911_v5 }
 0x49a   : > { %v3347_v33 = vpop.f32.mrf.mxu0 }
 0x49b   : > { %2859 = vst [vmem:[%s4068_s16] sm:$0xff] %v2797_v30  ;;  %v3348_v19 = vadd.f32 %v3347_v33, %v3346_v27 }
 0x49c   : > { %v3349_v21 = vpop.f32.mrf.mxu0 }
 0x49d   : > { %v2800_v20 = vadd.f32 %v3348_v19, %v4911_v5 }
 0x49e   : > { %v3350_v37 = vpop.f32.mrf.mxu0 }
 0x49f   : > { %2860 = vst [vmem:[%s4068_s16 + $0x8] sm:$0xff] %v2800_v20  ;;  %v3351_v43 = vadd.f32 %v3350_v37, %v3349_v21 }
 0x4a0   : > { %v3352_v46 = vpop.f32.mrf.mxu0 }
 0x4a1   : > { %v2805_v49 = vadd.f32 %v3351_v43, %v4911_v5 }
 0x4a2   : > { %v3353_v24 = vpop.f32.mrf.mxu0 }
 0x4a3   : > { %2861 = vst [vmem:[%s4068_s16 + $0x10] sm:$0xff] %v2805_v49  ;;  %v3354_v51 = vadd.f32 %v3353_v24, %v3352_v46 }
 0x4a4   : > { %v3355_v23 = vpop.f32.mrf.mxu0 }
 0x4a5   : > { %v2808_v52 = vadd.f32 %v3354_v51, %v4911_v5 }
 0x4a6   : > { %v3356_v25 = vpop.f32.mrf.mxu0 }
 0x4a7   : > { %2862 = vst [vmem:[%s4068_s16 + $0x18] sm:$0xff] %v2808_v52  ;;  %v3357_v38 = vadd.f32 %v3356_v25, %v3355_v23 }
 0x4a8   : > { %v3358_v39 = vpop.f32.mrf.mxu0 }
 0x4a9   : > { %v2813_v22 = vadd.f32 %v3357_v38, %v4911_v5 }
 0x4aa   : > { %v3359_v53 = vpop.f32.mrf.mxu0 }
 0x4ab   : > { %2863 = vst [vmem:[%s4068_s16 + $0x20] sm:$0xff] %v2813_v22  ;;  %v3360_v40 = vadd.f32 %v3359_v53, %v3358_v39 }
 0x4ac   : > { %v3361_v26 = vpop.f32.mrf.mxu0 }
 0x4ad   : > { %v2816_v55 = vadd.f32 %v3360_v40, %v4911_v5 }
 0x4ae   : > { %v3362_v28 = vpop.f32.mrf.mxu0 }
 0x4af   : > { %2864 = vst [vmem:[%s4068_s16 + $0x28] sm:$0xff] %v2816_v55  ;;  %v3363_v56 = vadd.f32 %v3362_v28, %v3361_v26 }
 0x4b0   : > { %v3364_v58 = vpop.f32.mrf.mxu0 }
 0x4b1   : > { %v2821_v60 = vadd.f32 %v3363_v56, %v4911_v5 }
 0x4b2   : > { %v3365_v29 = vpop.f32.mrf.mxu0 }
 0x4b3   : > { %2865 = vst [vmem:[%s4068_s16 + $0x30] sm:$0xff] %v2821_v60  ;;  %v3366_v61 = vadd.f32 %v3365_v29, %v3364_v58 }
 0x4b4   : > { %v3367_v31 = vpop.f32.mrf.mxu0 }
 0x4b5   : > { %v2824_v42 = vadd.f32 %v3366_v61, %v4911_v5 }
 0x4b6   : > { %v3368_v35 = vpop.f32.mrf.mxu0 }
 0x4b7   : > { %2866 = vst [vmem:[%s4068_s16 + $0x38] sm:$0xff] %v2824_v42  ;;  %v3369_v62 = vadd.f32 %v3368_v35, %v3367_v31 }
 0x4b8   : > { %v3370_v41 = vpop.f32.mrf.mxu0 }
 0x4b9   : > { %v2829_v63 = vadd.f32 %v3369_v62, %v4911_v5 }
 0x4ba   : > { %v3371_v0 = vpop.f32.mrf.mxu0 }
 0x4bb   : > { %2867 = vst [vmem:[%s4068_s16 + $0x40] sm:$0xff] %v2829_v63  ;;  %v3372_v45 = vadd.f32 %v3371_v0, %v3370_v41 }
 0x4bc   : > { %v3373_v32 = vpop.f32.mrf.mxu0 }
 0x4bd   : > { %v2832_v1 = vadd.f32 %v3372_v45, %v4911_v5 }
 0x4be   : > { %v3374_v34 = vpop.f32.mrf.mxu0 }
 0x4bf   : > { %2868 = vst [vmem:[%s4068_s16 + $0x48] sm:$0xff] %v2832_v1  ;;  %v3375_v54 = vadd.f32 %v3374_v34, %v3373_v32 }
 0x4c0   : > { %v3376_v57 = vpop.f32.mrf.mxu0 }
 0x4c1   : > { %v2837_v2 = vadd.f32 %v3375_v54, %v4911_v5 }
 0x4c2   : > { %v3377_v6 = vpop.f32.mrf.mxu0 }
 0x4c3   : > { %2869 = vst [vmem:[%s4068_s16 + $0x50] sm:$0xff] %v2837_v2  ;;  %v3378_v7 = vadd.f32 %v3377_v6, %v3376_v57 }
 0x4c4   : > { %v3379_v8 = vpop.f32.mrf.mxu0 }
 0x4c5   : > { %v2840_v36 = vadd.f32 %v3378_v7, %v4911_v5 }
 0x4c6   : > { %v3380_v9 = vpop.f32.mrf.mxu0 }
 0x4c7   : > { %2870 = vst [vmem:[%s4068_s16 + $0x58] sm:$0xff] %v2840_v36  ;;  %v3381_v59 = vadd.f32 %v3380_v9, %v3379_v8 }
 0x4c8   : > { %v3382_v10 = vpop.f32.mrf.mxu0 }
 0x4c9   : > { %v2845_v44 = vadd.f32 %v3381_v59, %v4911_v5 }
 0x4ca   : > { %v3383_v47 = vpop.f32.mrf.mxu0 }
 0x4cb   : > { %2871 = vst [vmem:[%s4068_s16 + $0x60] sm:$0xff] %v2845_v44  ;;  %v3384_v48 = vadd.f32 %v3383_v47, %v3382_v10 }
 0x4cc   : > { %v3385_v3 = vpop.f32.mrf.mxu1 }
 0x4cd   : > { %v2848_v12 = vadd.f32 %v3384_v48, %v4911_v5 }
 0x4ce   : > { %v3386_v13 = vpop.f32.mrf.mxu1 }
 0x4cf   : > { %2872 = vst [vmem:[%s4068_s16 + $0x68] sm:$0xff] %v2848_v12  ;;  %v3387_v50 = vadd.f32 %v3386_v13, %v3385_v3 }
 0x4d0   : > { %v3388_v14 = vpop.f32.mrf.mxu1 }
 0x4d1   : > { %v2853_v15 = vadd.f32 %v3387_v50, %v4911_v5 }
 0x4d2   : > { %v3389_v11 = vpop.f32.mrf.mxu1 }
 0x4d3   : > { %2873 = vst [vmem:[%s4068_s16 + $0x70] sm:$0xff] %v2853_v15  ;;  %v3390_v16 = vadd.f32 %v3389_v11, %v3388_v14 }
 0x4d5   : > { %v2856_v4 = vadd.f32 %v3390_v16, %v4911_v5 }
 0x4d7   : > { %2874 = vst [vmem:[%s4068_s16 + $0x78] sm:$0xff] %v2856_v4 }
 0x4d8 PF: > { %s5031_s26 = sld [smem:[#allocation12_spill]] }
 0x4d9   : > { %s5032_s25 = sld [smem:[#allocation6_spill]] }
 0x4de   : > { %p3413_p3 = scmp.ge.s32.totalorder %s5031_s26, 2 }
 0x4df   : > { %s2920_s20 = sand.u32 1, %s5032_s25  }
 0x4e0   : > { %p3410_p4 = pnand %p3413_p3, %p4033_p8  ;;  %s2921_s23 = scalar_lea.sflag [#allocation4], %s2920_s20 }
 0x4e2   : > { %p3411_p5 = pneg %p3410_p4 }
 0x4e4   : > { %3864 = dma.done.wait (%p3411_p5), %s2921_s23, 4096  }
 0x4e5   : > { %3866 = vsyncadd (%p3411_p5), %s2921_s23, 4294963200  ;;  %s27_s15 = sadd.s32 1, %s5031_s26   ;;  %s5034_s25 = sld [smem:[#allocation7_spill]] }
 0x4e6   : > { %p24_p6 = scmp.ge.s32.totalorder %s27_s15, 6   ;;  %s5035_s26 = sld [smem:[#allocation8_spill]] }
 0x4e7   : > { %s5036_s27 = sld [smem:[#allocation17_spill]] }
 0x4e8   : > { %s5037_s28 = sld [smem:[#allocation10_spill]]  ;;  %26 = sbr.rel (!%p24_p6) target bundleno = 11 (0xb), region = 125 }
 0x4e9   : > { %s5038_s29 = sld [smem:[#allocation11_spill]] }
 0x4ea   : > { %s5039_s30 = sld [smem:[#allocation13_spill]] }
 0x4eb   : > { %s5040_s14 = sld [smem:[#allocation15_spill]] }
 0x4ed   :  { %2938 = vsyncpa [#allocation4], 1 }
 0x4ee   :  { %2940 = vsyncpa [#allocation4 + $0x1], 1 }

</bundles_post_ra>
